<compile_context>
chip_gen: v6e
topology: v6e:2x2x1
jax: 0.10.0
libtpu: 0.0.40
codegen_flags: <defaults>
</compile_context>

<pallas_src>
import jax
import jax.numpy as jnp
from jax import lax
from jax.experimental import pallas as pl
from jax.experimental.pallas import tpu as pltpu

LANE = 128


def _round_up(n, m):
    return ((n + m - 1) // m) * m


def _decoder_kernel(x_ref,            # (T, Hp)   f32  gathered embedding rows
                    h0_ref, c0_ref,   # (1, Hp)   f32  initial LSTM state
                    wih_ref,          # (Hp, 4Hp) bf16 W_ih^T, gate-blocked cols [i,f,g,o]
                    whh_ref,          # (Hp, 4Hp) bf16 W_hh^T, gate-blocked cols
                    bg_ref,           # (1, 4Hp)  f32  b_ih + b_hh, gate-blocked
                    wout_ref,         # (Hp, Op)  bf16 W_out^T
                    bout_ref,         # (1, Op)   f32  b_out (padded vocab = -1e30)
                    logp_ref,         # (T, Op)   f32  OUT: log-probs
                    h_out_ref,        # (1, Hp)   f32  OUT: h_T
                    c_out_ref,        # (1, Hp)   f32  OUT: c_T
                    gx_sc,            # (T, 4Hp)  f32  scratch: input-side gate pre-acts
                    h_hist):          # (T, Hp)   f32  scratch: per-step hidden states
    T, Hp = h_hist.shape

    # ---- Prologue (batched, off the serial critical path) -----------------
    # relu(embedding(tokens)) and the input half of ALL gate pre-activations
    # as one (T, Hp) @ (Hp, 4Hp) MXU matmul; biases folded in.
    x = jnp.maximum(x_ref[...], 0.0)                               # relu
    gx_sc[...] = jnp.dot(x.astype(jnp.bfloat16), wih_ref[...],
                         preferred_element_type=jnp.float32) + bg_ref[...]

    # ---- Serial recurrence: only h @ W_hh^T left per step ------------------
    def step(t, carry):
        h, c = carry                                               # (1, Hp) f32
        gates = gx_sc[pl.ds(t, 1), :] + jnp.dot(
            h.astype(jnp.bfloat16), whh_ref[...],
            preferred_element_type=jnp.float32)                    # (1, 4Hp) f32
        # Each gate occupies its own lane-aligned Hp-wide block -> free views.
        i_g = jax.nn.sigmoid(gates[:, 0 * Hp:1 * Hp])
        f_g = jax.nn.sigmoid(gates[:, 1 * Hp:2 * Hp])
        g_g = jnp.tanh(gates[:, 2 * Hp:3 * Hp])
        o_g = jax.nn.sigmoid(gates[:, 3 * Hp:4 * Hp])
        c_new = f_g * c + i_g * g_g
        h_new = o_g * jnp.tanh(c_new)
        h_hist[pl.ds(t, 1), :] = h_new                             # record for epilogue
        return (h_new, c_new)

    h_T, c_T = lax.fori_loop(0, T, step, (h0_ref[...], c0_ref[...]), unroll=True)
    h_out_ref[...] = h_T
    c_out_ref[...] = c_T

    # ---- Epilogue (batched): output projection + log-softmax ---------------
    logits = jnp.dot(h_hist[...].astype(jnp.bfloat16), wout_ref[...],
                     preferred_element_type=jnp.float32) + bout_ref[...]  # (T, Op) f32
    m = jnp.max(logits, axis=1, keepdims=True)
    lse = m + jnp.log(jnp.sum(jnp.exp(logits - m), axis=1, keepdims=True))
    logp_ref[...] = logits - lse                                   # one lane-dense store


def init_params(key, hidden_size, output_size):
    """PyTorch-layout parameters (nn.Embedding / nn.LSTM / nn.Linear style)."""
    k = 1.0 / jnp.sqrt(hidden_size)
    keys = jax.random.split(key, 7)
    u = lambda kk, shape: jax.random.uniform(kk, shape, jnp.float32, -k, k)
    return {
        "embedding": jax.random.normal(keys[0], (output_size, hidden_size), jnp.float32),
        "w_ih": u(keys[1], (4 * hidden_size, hidden_size)),   # gate order [i,f,g,o]
        "w_hh": u(keys[2], (4 * hidden_size, hidden_size)),
        "b_ih": u(keys[3], (4 * hidden_size,)),
        "b_hh": u(keys[4], (4 * hidden_size,)),
        "w_out": u(keys[5], (output_size, hidden_size)),
        "b_out": u(keys[6], (output_size,)),
    }


def prepare_params(params):
    """One-time host-side prep: transpose, gate-block, pad to 128 lanes, cast bf16."""
    emb = params["embedding"]
    O, H = emb.shape
    Hp, Op = _round_up(H, LANE), _round_up(O, LANE)

    # Embedding table, hidden dim zero-padded (row gather happens in plain XLA
    # before the kernel -> one lane-dense (T, Hp) operand).
    emb_p = jnp.zeros((O, Hp), jnp.float32).at[:, :H].set(emb)

    # Split gate weights, transposed and gate-blocked: each of the 4 gates gets
    # its own lane-aligned Hp-wide column block; padded rows/cols stay zero.
    wihT, whhT = params["w_ih"].T, params["w_hh"].T               # (H, 4H)
    wih_f = jnp.zeros((Hp, 4 * Hp), jnp.float32)
    whh_f = jnp.zeros((Hp, 4 * Hp), jnp.float32)
    bg = jnp.zeros((1, 4 * Hp), jnp.float32)
    b_sum = params["b_ih"] + params["b_hh"]
    for g in range(4):
        wih_f = wih_f.at[:H, g * Hp:g * Hp + H].set(wihT[:, g * H:(g + 1) * H])
        whh_f = whh_f.at[:H, g * Hp:g * Hp + H].set(whhT[:, g * H:(g + 1) * H])
        bg = bg.at[0, g * Hp:g * Hp + H].set(b_sum[g * H:(g + 1) * H])

    # Output projection W_out^T, zero padded.  Padded vocab entries get a -1e30
    # bias so they contribute nothing to the (f32) log-softmax.
    wout = jnp.zeros((Hp, Op), jnp.float32).at[:H, :O].set(params["w_out"].T)
    bout = jnp.full((1, Op), -1e30, jnp.float32).at[0, :O].set(params["b_out"])

    return {
        "H": H, "O": O,
        "embedding": emb_p,
        "w_ih_f": wih_f.astype(jnp.bfloat16),
        "w_hh_f": whh_f.astype(jnp.bfloat16),
        "b_gates": bg,
        "w_out": wout.astype(jnp.bfloat16),
        "b_out": bout,
    }


def decoder_rnn_forward(tokens, hidden, prepped):
    """Teacher-forced decode of `tokens` (shape (T,), int32) in ONE kernel launch.

    Each step is exactly DecoderRNN.forward(token_t, hidden); T=1 reproduces the
    PyTorch module call.  Returns (log_probs (T, output_size) f32,
    (h, c) each (1, 1, hidden_size)) where (h, c) is the state after step T-1.
    """
    H, O = prepped["H"], prepped["O"]
    emb_p = prepped["embedding"]
    Hp = emb_p.shape[1]
    Op = prepped["b_out"].shape[1]
    T = int(tokens.shape[0])

    # Bounds-safe gather (PyTorch would raise on OOB ids; we clip instead).
    tok = jnp.clip(tokens.astype(jnp.int32), 0, O - 1)
    x = jnp.take(emb_p, tok, axis=0)                      # (T, Hp) f32, one XLA gather

    h0, c0 = hidden
    pad_state = lambda s: jnp.pad(s.reshape(1, -1).astype(jnp.float32),
                                  ((0, 0), (0, Hp - H)))

    logp, h_t, c_t = pl.pallas_call(
        _decoder_kernel,
        out_shape=(jax.ShapeDtypeStruct((T, Op), jnp.float32),
                   jax.ShapeDtypeStruct((1, Hp), jnp.float32),
                   jax.ShapeDtypeStruct((1, Hp), jnp.float32)),
        # Single invocation (no grid): every operand is one full-array VMEM
        # block, so weights are DMA'd exactly once and single-buffered, and
        # there is zero per-step grid/pipeline overhead.
        scratch_shapes=[pltpu.VMEM((T, 4 * Hp), jnp.float32),   # Gx pre-activations
                        pltpu.VMEM((T, Hp), jnp.float32)],      # hidden-state history
    )(x, pad_state(h0), pad_state(c0),
      prepped["w_ih_f"], prepped["w_hh_f"], prepped["b_gates"],
      prepped["w_out"], prepped["b_out"])

    return (logp[:, :O],
            (h_t[:, :H].reshape(1, 1, H), c_t[:, :H].reshape(1, 1, H)))


def decoder_rnn_reference(tokens, hidden, prepped):
    """Pure-JAX mirror of the kernel's padded / bf16-weight arithmetic."""
    H, O = prepped["H"], prepped["O"]
    emb = prepped["embedding"]
    Hp = emb.shape[1]
    Wih = prepped["w_ih_f"].astype(jnp.float32)
    Whh = prepped["w_hh_f"].astype(jnp.float32)
    bg = prepped["b_gates"]
    Wo = prepped["w_out"].astype(jnp.float32)
    bo = prepped["b_out"]
    pad_state = lambda s: jnp.pad(s.reshape(1, -1).astype(jnp.float32),
                                  ((0, 0), (0, Hp - H)))

    tok = jnp.clip(tokens.astype(jnp.int32), 0, O - 1)
    x = jnp.maximum(jnp.take(emb, tok, axis=0), 0.0)                    # (T, Hp)
    gx = x.astype(jnp.bfloat16).astype(jnp.float32) @ Wih + bg          # (T, 4Hp)

    def step(carry, gx_t):
        h, c = carry
        gates = gx_t[None, :] + h.astype(jnp.bfloat16).astype(jnp.float32) @ Whh
        i = jax.nn.sigmoid(gates[:, 0 * Hp:1 * Hp])
        f = jax.nn.sigmoid(gates[:, 1 * Hp:2 * Hp])
        g = jnp.tanh(gates[:, 2 * Hp:3 * Hp])
        o = jax.nn.sigmoid(gates[:, 3 * Hp:4 * Hp])
        c1 = f * c + i * g
        h1 = o * jnp.tanh(c1)
        return (h1, c1), h1[0]

    (h, c), hs = jax.lax.scan(step, (pad_state(hidden[0]), pad_state(hidden[1])), gx)
    logits = hs.astype(jnp.bfloat16).astype(jnp.float32) @ Wo + bo
    logp = jax.nn.log_softmax(logits, axis=1)
    return logp[:, :O], (h[:, :H].reshape(1, 1, H), c[:, :H].reshape(1, 1, H))


def decoder_rnn_reference_f32(tokens, hidden, params):
    """Exact PyTorch-math (f32, unfused, unpadded) reference for module semantics."""
    H = params["embedding"].shape[1]

    def step(carry, tok):
        h, c = carry
        x = jnp.maximum(params["embedding"][tok][None, :], 0.0)
        gates = (x @ params["w_ih"].T + params["b_ih"]
                 + h @ params["w_hh"].T + params["b_hh"])
        i = jax.nn.sigmoid(gates[:, 0 * H:1 * H])
        f = jax.nn.sigmoid(gates[:, 1 * H:2 * H])
        g = jnp.tanh(gates[:, 2 * H:3 * H])
        o = jax.nn.sigmoid(gates[:, 3 * H:4 * H])
        c1 = f * c + i * g
        h1 = o * jnp.tanh(c1)
        logits = h1 @ params["w_out"].T + params["b_out"]
        return (h1, c1), jax.nn.log_softmax(logits, axis=1)[0]

    (h, c), logps = jax.lax.scan(
        step, (hidden[0].reshape(1, H), hidden[1].reshape(1, H)), tokens)
    return logps, (h.reshape(1, 1, H), c.reshape(1, 1, H))


if __name__ == "__main__":
    hidden_size = 32
    output_size = 16
    seq_len = 8

    key = jax.random.PRNGKey(0)
    pkey, hkey, ckey, tkey = jax.random.split(key, 4)
    params = init_params(pkey, hidden_size, output_size)
    prepped = prepare_params(params)   # one-time: transpose/gate-block/pad/bf16-cast

    tokens = jax.random.randint(tkey, (seq_len,), 0, output_size, dtype=jnp.int32)
    h0 = 0.1 * jax.random.normal(hkey, (1, 1, hidden_size), jnp.float32)
    c0 = 0.1 * jax.random.normal(ckey, (1, 1, hidden_size), jnp.float32)

    # Teacher-forced decode: one kernel launch runs all 8 steps.
    logp, (h1, c1) = decoder_rnn_forward(tokens, (h0, c0), prepped)
    jax.block_until_ready((logp, h1, c1))

    # Strict check vs. a reference mirroring the kernel's bf16/padded math.
    ref_logp, (rh, rc) = decoder_rnn_reference(tokens, (h0, c0), prepped)
    assert jnp.allclose(logp, ref_logp, atol=5e-3, rtol=5e-3)
    assert jnp.allclose(h1, rh, atol=5e-3, rtol=5e-3)
    assert jnp.allclose(c1, rc, atol=5e-3, rtol=5e-3)

    # Semantics check vs. exact PyTorch-math f32 reference (bf16-weight tolerance).
    f32_logp, (fh, fc) = decoder_rnn_reference_f32(tokens, (h0, c0), params)
    assert jnp.allclose(logp, f32_logp, atol=3e-2, rtol=3e-2)
    assert jnp.allclose(h1, fh, atol=3e-2, rtol=3e-2)
    assert jnp.allclose(c1, fc, atol=3e-2, rtol=3e-2)

    # T=1 call reproduces DecoderRNN.forward(input, hidden) exactly.
    logp1, _ = decoder_rnn_forward(tokens[:1], (h0, c0), prepped)
    jax.block_until_ready(logp1)
    ref1, _ = decoder_rnn_reference_f32(tokens[:1], (h0, c0), params)
    assert logp1.shape == (1, output_size)
    assert jnp.allclose(logp1, ref1, atol=3e-2, rtol=3e-2)

    print("KERNEL_OK")
</pallas_src>

<mosaic_0001>
module attributes {stable_mosaic.version = 11 : i64} {
  func.func @_decoder_kernel(%arg0: memref<8x128xf32, #tpu.memory_space<vmem>>, %arg1: memref<1x128xf32, #tpu.memory_space<vmem>>, %arg2: memref<1x128xf32, #tpu.memory_space<vmem>>, %arg3: memref<128x512xbf16, #tpu.memory_space<vmem>>, %arg4: memref<128x512xbf16, #tpu.memory_space<vmem>>, %arg5: memref<1x512xf32, #tpu.memory_space<vmem>>, %arg6: memref<128x128xbf16, #tpu.memory_space<vmem>>, %arg7: memref<1x128xf32, #tpu.memory_space<vmem>>, %arg8: memref<8x128xf32, #tpu.memory_space<vmem>>, %arg9: memref<1x128xf32, #tpu.memory_space<vmem>>, %arg10: memref<1x128xf32, #tpu.memory_space<vmem>>, %arg11: memref<8x512xf32, #tpu.memory_space<vmem>>, %arg12: memref<8x128xf32, #tpu.memory_space<vmem>>) attributes {dimension_semantics = [], scalar_prefetch = 0 : i64, scratch_operands = 2 : i64, tpu.core_type = #tpu.core_type<tc>} {
    %c0 = arith.constant 0 : index
    %c0_0 = arith.constant 0 : index
    %0 = vector.load %arg0[%c0, %c0_0] : memref<8x128xf32, #tpu.memory_space<vmem>>, vector<8x128xf32>
    %cst = arith.constant 0.000000e+00 : f32
    %1 = vector.broadcast %cst : f32 to vector<8x128xf32>
    %2 = arith.maximumf %0, %1 : vector<8x128xf32>
    %3 = arith.truncf %2 : vector<8x128xf32> to vector<8x128xbf16>
    %c0_1 = arith.constant 0 : index
    %c0_2 = arith.constant 0 : index
    %4 = vector.load %arg3[%c0_1, %c0_2] : memref<128x512xbf16, #tpu.memory_space<vmem>>, vector<128x512xbf16>
    %cst_3 = arith.constant dense<0.000000e+00> : vector<8x512xf32>
    %5 = tpu.matmul %3, %4, %cst_3 {dimension_numbers = #tpu.dot_dimension_numbers<[1], [0], [0], [1], [0, 0, 1, 1], [], []>} : vector<8x128xbf16>, vector<128x512xbf16>, vector<8x512xf32> -> vector<8x512xf32>
    %c0_4 = arith.constant 0 : index
    %c0_5 = arith.constant 0 : index
    %6 = vector.load %arg5[%c0_4, %c0_5] : memref<1x512xf32, #tpu.memory_space<vmem>>, vector<1x512xf32>
    %7 = vector.broadcast %6 : vector<1x512xf32> to vector<8x512xf32>
    %8 = arith.addf %5, %7 : vector<8x512xf32>
    %c0_6 = arith.constant 0 : index
    %c0_7 = arith.constant 0 : index
    %9 = vector.load %arg11[%c0_6, %c0_7] : memref<8x512xf32, #tpu.memory_space<vmem>>, vector<8x512xf32>
    tpu.vector_store %arg11[%c0_6, %c0_7], %8 {strides = array<i32>} : memref<8x512xf32, #tpu.memory_space<vmem>>, vector<8x512xf32>,
    %c0_8 = arith.constant 0 : index
    %c0_9 = arith.constant 0 : index
    %10 = vector.load %arg1[%c0_8, %c0_9] : memref<1x128xf32, #tpu.memory_space<vmem>>, vector<1x128xf32>
    %c0_10 = arith.constant 0 : index
    %c0_11 = arith.constant 0 : index
    %11 = vector.load %arg2[%c0_10, %c0_11] : memref<1x128xf32, #tpu.memory_space<vmem>>, vector<1x128xf32>
    %c0_i32 = arith.constant 0 : i32
    %12 = arith.index_cast %c0_i32 : i32 to index
    %c0_12 = arith.constant 0 : index
    %13 = vector.load %arg11[%12, %c0_12] : memref<8x512xf32, #tpu.memory_space<vmem>>, vector<1x512xf32>
    %14 = arith.truncf %10 : vector<1x128xf32> to vector<1x128xbf16>
    %c0_13 = arith.constant 0 : index
    %c0_14 = arith.constant 0 : index
    %15 = vector.load %arg4[%c0_13, %c0_14] : memref<128x512xbf16, #tpu.memory_space<vmem>>, vector<128x512xbf16>
    %cst_15 = arith.constant dense<0.000000e+00> : vector<1x512xf32>
    %16 = tpu.matmul %14, %15, %cst_15 {dimension_numbers = #tpu.dot_dimension_numbers<[1], [0], [0], [1], [0, 0, 1, 1], [], []>} : vector<1x128xbf16>, vector<128x512xbf16>, vector<1x512xf32> -> vector<1x512xf32>
    %17 = arith.addf %13, %16 : vector<1x512xf32>
    %18 = vector.extract_strided_slice %17 {offsets = [0, 0], sizes = [1, 128], strides = [1, 1]} : vector<1x512xf32> to vector<1x128xf32>
    %19 = arith.negf %18 : vector<1x128xf32>
    %20 = math.exp %19 : vector<1x128xf32>
    %cst_16 = arith.constant 1.000000e+00 : f32
    %21 = vector.broadcast %cst_16 : f32 to vector<1x128xf32>
    %22 = arith.addf %21, %20 : vector<1x128xf32>
    %23 = arith.divf %21, %22 : vector<1x128xf32>
    %24 = vector.extract_strided_slice %17 {offsets = [0, 128], sizes = [1, 128], strides = [1, 1]} : vector<1x512xf32> to vector<1x128xf32>
    %25 = arith.negf %24 : vector<1x128xf32>
    %26 = math.exp %25 : vector<1x128xf32>
    %cst_17 = arith.constant 1.000000e+00 : f32
    %27 = vector.broadcast %cst_17 : f32 to vector<1x128xf32>
    %28 = arith.addf %27, %26 : vector<1x128xf32>
    %29 = arith.divf %27, %28 : vector<1x128xf32>
    %30 = vector.extract_strided_slice %17 {offsets = [0, 256], sizes = [1, 128], strides = [1, 1]} : vector<1x512xf32> to vector<1x128xf32>
    %31 = math.tanh %30 : vector<1x128xf32>
    %32 = vector.extract_strided_slice %17 {offsets = [0, 384], sizes = [1, 128], strides = [1, 1]} : vector<1x512xf32> to vector<1x128xf32>
    %33 = arith.negf %32 : vector<1x128xf32>
    %34 = math.exp %33 : vector<1x128xf32>
    %cst_18 = arith.constant 1.000000e+00 : f32
    %35 = vector.broadcast %cst_18 : f32 to vector<1x128xf32>
    %36 = arith.addf %35, %34 : vector<1x128xf32>
    %37 = arith.divf %35, %36 : vector<1x128xf32>
    %38 = arith.mulf %29, %11 : vector<1x128xf32>
    %39 = arith.mulf %23, %31 : vector<1x128xf32>
    %40 = arith.addf %38, %39 : vector<1x128xf32>
    %41 = math.tanh %40 : vector<1x128xf32>
    %42 = arith.mulf %37, %41 : vector<1x128xf32>
    %43 = arith.index_cast %c0_i32 : i32 to index
    %c0_19 = arith.constant 0 : index
    %44 = vector.load %arg12[%43, %c0_19] : memref<8x128xf32, #tpu.memory_space<vmem>>, vector<1x128xf32>
    tpu.vector_store %arg12[%43, %c0_19], %42 {strides = array<i32>} : memref<8x128xf32, #tpu.memory_space<vmem>>, vector<1x128xf32>,
    %c1_i32 = arith.constant 1 : i32
    %45 = arith.index_cast %c1_i32 : i32 to index
    %c0_20 = arith.constant 0 : index
    %46 = vector.load %arg11[%45, %c0_20] : memref<8x512xf32, #tpu.memory_space<vmem>>, vector<1x512xf32>
    %47 = arith.truncf %42 : vector<1x128xf32> to vector<1x128xbf16>
    %c0_21 = arith.constant 0 : index
    %c0_22 = arith.constant 0 : index
    %48 = vector.load %arg4[%c0_21, %c0_22] : memref<128x512xbf16, #tpu.memory_space<vmem>>, vector<128x512xbf16>
    %cst_23 = arith.constant dense<0.000000e+00> : vector<1x512xf32>
    %49 = tpu.matmul %47, %48, %cst_23 {dimension_numbers = #tpu.dot_dimension_numbers<[1], [0], [0], [1], [0, 0, 1, 1], [], []>} : vector<1x128xbf16>, vector<128x512xbf16>, vector<1x512xf32> -> vector<1x512xf32>
    %50 = arith.addf %46, %49 : vector<1x512xf32>
    %51 = vector.extract_strided_slice %50 {offsets = [0, 0], sizes = [1, 128], strides = [1, 1]} : vector<1x512xf32> to vector<1x128xf32>
    %52 = arith.negf %51 : vector<1x128xf32>
    %53 = math.exp %52 : vector<1x128xf32>
    %cst_24 = arith.constant 1.000000e+00 : f32
    %54 = vector.broadcast %cst_24 : f32 to vector<1x128xf32>
    %55 = arith.addf %54, %53 : vector<1x128xf32>
    %56 = arith.divf %54, %55 : vector<1x128xf32>
    %57 = vector.extract_strided_slice %50 {offsets = [0, 128], sizes = [1, 128], strides = [1, 1]} : vector<1x512xf32> to vector<1x128xf32>
    %58 = arith.negf %57 : vector<1x128xf32>
    %59 = math.exp %58 : vector<1x128xf32>
    %cst_25 = arith.constant 1.000000e+00 : f32
    %60 = vector.broadcast %cst_25 : f32 to vector<1x128xf32>
    %61 = arith.addf %60, %59 : vector<1x128xf32>
    %62 = arith.divf %60, %61 : vector<1x128xf32>
    %63 = vector.extract_strided_slice %50 {offsets = [0, 256], sizes = [1, 128], strides = [1, 1]} : vector<1x512xf32> to vector<1x128xf32>
    %64 = math.tanh %63 : vector<1x128xf32>
    %65 = vector.extract_strided_slice %50 {offsets = [0, 384], sizes = [1, 128], strides = [1, 1]} : vector<1x512xf32> to vector<1x128xf32>
    %66 = arith.negf %65 : vector<1x128xf32>
    %67 = math.exp %66 : vector<1x128xf32>
    %cst_26 = arith.constant 1.000000e+00 : f32
    %68 = vector.broadcast %cst_26 : f32 to vector<1x128xf32>
    %69 = arith.addf %68, %67 : vector<1x128xf32>
    %70 = arith.divf %68, %69 : vector<1x128xf32>
    %71 = arith.mulf %62, %40 : vector<1x128xf32>
    %72 = arith.mulf %56, %64 : vector<1x128xf32>
    %73 = arith.addf %71, %72 : vector<1x128xf32>
    %74 = math.tanh %73 : vector<1x128xf32>
    %75 = arith.mulf %70, %74 : vector<1x128xf32>
    %76 = arith.index_cast %c1_i32 : i32 to index
    %c0_27 = arith.constant 0 : index
    %77 = vector.load %arg12[%76, %c0_27] : memref<8x128xf32, #tpu.memory_space<vmem>>, vector<1x128xf32>
    tpu.vector_store %arg12[%76, %c0_27], %75 {strides = array<i32>} : memref<8x128xf32, #tpu.memory_space<vmem>>, vector<1x128xf32>,
    %c2_i32 = arith.constant 2 : i32
    %78 = arith.index_cast %c2_i32 : i32 to index
    %c0_28 = arith.constant 0 : index
    %79 = vector.load %arg11[%78, %c0_28] : memref<8x512xf32, #tpu.memory_space<vmem>>, vector<1x512xf32>
    %80 = arith.truncf %75 : vector<1x128xf32> to vector<1x128xbf16>
    %c0_29 = arith.constant 0 : index
    %c0_30 = arith.constant 0 : index
    %81 = vector.load %arg4[%c0_29, %c0_30] : memref<128x512xbf16, #tpu.memory_space<vmem>>, vector<128x512xbf16>
    %cst_31 = arith.constant dense<0.000000e+00> : vector<1x512xf32>
    %82 = tpu.matmul %80, %81, %cst_31 {dimension_numbers = #tpu.dot_dimension_numbers<[1], [0], [0], [1], [0, 0, 1, 1], [], []>} : vector<1x128xbf16>, vector<128x512xbf16>, vector<1x512xf32> -> vector<1x512xf32>
    %83 = arith.addf %79, %82 : vector<1x512xf32>
    %84 = vector.extract_strided_slice %83 {offsets = [0, 0], sizes = [1, 128], strides = [1, 1]} : vector<1x512xf32> to vector<1x128xf32>
    %85 = arith.negf %84 : vector<1x128xf32>
    %86 = math.exp %85 : vector<1x128xf32>
    %cst_32 = arith.constant 1.000000e+00 : f32
    %87 = vector.broadcast %cst_32 : f32 to vector<1x128xf32>
    %88 = arith.addf %87, %86 : vector<1x128xf32>
    %89 = arith.divf %87, %88 : vector<1x128xf32>
    %90 = vector.extract_strided_slice %83 {offsets = [0, 128], sizes = [1, 128], strides = [1, 1]} : vector<1x512xf32> to vector<1x128xf32>
    %91 = arith.negf %90 : vector<1x128xf32>
    %92 = math.exp %91 : vector<1x128xf32>
    %cst_33 = arith.constant 1.000000e+00 : f32
    %93 = vector.broadcast %cst_33 : f32 to vector<1x128xf32>
    %94 = arith.addf %93, %92 : vector<1x128xf32>
    %95 = arith.divf %93, %94 : vector<1x128xf32>
    %96 = vector.extract_strided_slice %83 {offsets = [0, 256], sizes = [1, 128], strides = [1, 1]} : vector<1x512xf32> to vector<1x128xf32>
    %97 = math.tanh %96 : vector<1x128xf32>
    %98 = vector.extract_strided_slice %83 {offsets = [0, 384], sizes = [1, 128], strides = [1, 1]} : vector<1x512xf32> to vector<1x128xf32>
    %99 = arith.negf %98 : vector<1x128xf32>
    %100 = math.exp %99 : vector<1x128xf32>
    %cst_34 = arith.constant 1.000000e+00 : f32
    %101 = vector.broadcast %cst_34 : f32 to vector<1x128xf32>
    %102 = arith.addf %101, %100 : vector<1x128xf32>
    %103 = arith.divf %101, %102 : vector<1x128xf32>
    %104 = arith.mulf %95, %73 : vector<1x128xf32>
    %105 = arith.mulf %89, %97 : vector<1x128xf32>
    %106 = arith.addf %104, %105 : vector<1x128xf32>
    %107 = math.tanh %106 : vector<1x128xf32>
    %108 = arith.mulf %103, %107 : vector<1x128xf32>
    %109 = arith.index_cast %c2_i32 : i32 to index
    %c0_35 = arith.constant 0 : index
    %110 = vector.load %arg12[%109, %c0_35] : memref<8x128xf32, #tpu.memory_space<vmem>>, vector<1x128xf32>
    tpu.vector_store %arg12[%109, %c0_35], %108 {strides = array<i32>} : memref<8x128xf32, #tpu.memory_space<vmem>>, vector<1x128xf32>,
    %c3_i32 = arith.constant 3 : i32
    %111 = arith.index_cast %c3_i32 : i32 to index
    %c0_36 = arith.constant 0 : index
    %112 = vector.load %arg11[%111, %c0_36] : memref<8x512xf32, #tpu.memory_space<vmem>>, vector<1x512xf32>
    %113 = arith.truncf %108 : vector<1x128xf32> to vector<1x128xbf16>
    %c0_37 = arith.constant 0 : index
    %c0_38 = arith.constant 0 : index
    %114 = vector.load %arg4[%c0_37, %c0_38] : memref<128x512xbf16, #tpu.memory_space<vmem>>, vector<128x512xbf16>
    %cst_39 = arith.constant dense<0.000000e+00> : vector<1x512xf32>
    %115 = tpu.matmul %113, %114, %cst_39 {dimension_numbers = #tpu.dot_dimension_numbers<[1], [0], [0], [1], [0, 0, 1, 1], [], []>} : vector<1x128xbf16>, vector<128x512xbf16>, vector<1x512xf32> -> vector<1x512xf32>
    %116 = arith.addf %112, %115 : vector<1x512xf32>
    %117 = vector.extract_strided_slice %116 {offsets = [0, 0], sizes = [1, 128], strides = [1, 1]} : vector<1x512xf32> to vector<1x128xf32>
    %118 = arith.negf %117 : vector<1x128xf32>
    %119 = math.exp %118 : vector<1x128xf32>
    %cst_40 = arith.constant 1.000000e+00 : f32
    %120 = vector.broadcast %cst_40 : f32 to vector<1x128xf32>
    %121 = arith.addf %120, %119 : vector<1x128xf32>
    %122 = arith.divf %120, %121 : vector<1x128xf32>
    %123 = vector.extract_strided_slice %116 {offsets = [0, 128], sizes = [1, 128], strides = [1, 1]} : vector<1x512xf32> to vector<1x128xf32>
    %124 = arith.negf %123 : vector<1x128xf32>
    %125 = math.exp %124 : vector<1x128xf32>
    %cst_41 = arith.constant 1.000000e+00 : f32
    %126 = vector.broadcast %cst_41 : f32 to vector<1x128xf32>
    %127 = arith.addf %126, %125 : vector<1x128xf32>
    %128 = arith.divf %126, %127 : vector<1x128xf32>
    %129 = vector.extract_strided_slice %116 {offsets = [0, 256], sizes = [1, 128], strides = [1, 1]} : vector<1x512xf32> to vector<1x128xf32>
    %130 = math.tanh %129 : vector<1x128xf32>
    %131 = vector.extract_strided_slice %116 {offsets = [0, 384], sizes = [1, 128], strides = [1, 1]} : vector<1x512xf32> to vector<1x128xf32>
    %132 = arith.negf %131 : vector<1x128xf32>
    %133 = math.exp %132 : vector<1x128xf32>
    %cst_42 = arith.constant 1.000000e+00 : f32
    %134 = vector.broadcast %cst_42 : f32 to vector<1x128xf32>
    %135 = arith.addf %134, %133 : vector<1x128xf32>
    %136 = arith.divf %134, %135 : vector<1x128xf32>
    %137 = arith.mulf %128, %106 : vector<1x128xf32>
    %138 = arith.mulf %122, %130 : vector<1x128xf32>
    %139 = arith.addf %137, %138 : vector<1x128xf32>
    %140 = math.tanh %139 : vector<1x128xf32>
    %141 = arith.mulf %136, %140 : vector<1x128xf32>
    %142 = arith.index_cast %c3_i32 : i32 to index
    %c0_43 = arith.constant 0 : index
    %143 = vector.load %arg12[%142, %c0_43] : memref<8x128xf32, #tpu.memory_space<vmem>>, vector<1x128xf32>
    tpu.vector_store %arg12[%142, %c0_43], %141 {strides = array<i32>} : memref<8x128xf32, #tpu.memory_space<vmem>>, vector<1x128xf32>,
    %c4_i32 = arith.constant 4 : i32
    %144 = arith.index_cast %c4_i32 : i32 to index
    %c0_44 = arith.constant 0 : index
    %145 = vector.load %arg11[%144, %c0_44] : memref<8x512xf32, #tpu.memory_space<vmem>>, vector<1x512xf32>
    %146 = arith.truncf %141 : vector<1x128xf32> to vector<1x128xbf16>
    %c0_45 = arith.constant 0 : index
    %c0_46 = arith.constant 0 : index
    %147 = vector.load %arg4[%c0_45, %c0_46] : memref<128x512xbf16, #tpu.memory_space<vmem>>, vector<128x512xbf16>
    %cst_47 = arith.constant dense<0.000000e+00> : vector<1x512xf32>
    %148 = tpu.matmul %146, %147, %cst_47 {dimension_numbers = #tpu.dot_dimension_numbers<[1], [0], [0], [1], [0, 0, 1, 1], [], []>} : vector<1x128xbf16>, vector<128x512xbf16>, vector<1x512xf32> -> vector<1x512xf32>
    %149 = arith.addf %145, %148 : vector<1x512xf32>
    %150 = vector.extract_strided_slice %149 {offsets = [0, 0], sizes = [1, 128], strides = [1, 1]} : vector<1x512xf32> to vector<1x128xf32>
    %151 = arith.negf %150 : vector<1x128xf32>
    %152 = math.exp %151 : vector<1x128xf32>
    %cst_48 = arith.constant 1.000000e+00 : f32
    %153 = vector.broadcast %cst_48 : f32 to vector<1x128xf32>
    %154 = arith.addf %153, %152 : vector<1x128xf32>
    %155 = arith.divf %153, %154 : vector<1x128xf32>
    %156 = vector.extract_strided_slice %149 {offsets = [0, 128], sizes = [1, 128], strides = [1, 1]} : vector<1x512xf32> to vector<1x128xf32>
    %157 = arith.negf %156 : vector<1x128xf32>
    %158 = math.exp %157 : vector<1x128xf32>
    %cst_49 = arith.constant 1.000000e+00 : f32
    %159 = vector.broadcast %cst_49 : f32 to vector<1x128xf32>
    %160 = arith.addf %159, %158 : vector<1x128xf32>
    %161 = arith.divf %159, %160 : vector<1x128xf32>
    %162 = vector.extract_strided_slice %149 {offsets = [0, 256], sizes = [1, 128], strides = [1, 1]} : vector<1x512xf32> to vector<1x128xf32>
    %163 = math.tanh %162 : vector<1x128xf32>
    %164 = vector.extract_strided_slice %149 {offsets = [0, 384], sizes = [1, 128], strides = [1, 1]} : vector<1x512xf32> to vector<1x128xf32>
    %165 = arith.negf %164 : vector<1x128xf32>
    %166 = math.exp %165 : vector<1x128xf32>
    %cst_50 = arith.constant 1.000000e+00 : f32
    %167 = vector.broadcast %cst_50 : f32 to vector<1x128xf32>
    %168 = arith.addf %167, %166 : vector<1x128xf32>
    %169 = arith.divf %167, %168 : vector<1x128xf32>
    %170 = arith.mulf %161, %139 : vector<1x128xf32>
    %171 = arith.mulf %155, %163 : vector<1x128xf32>
    %172 = arith.addf %170, %171 : vector<1x128xf32>
    %173 = math.tanh %172 : vector<1x128xf32>
    %174 = arith.mulf %169, %173 : vector<1x128xf32>
    %175 = arith.index_cast %c4_i32 : i32 to index
    %c0_51 = arith.constant 0 : index
    %176 = vector.load %arg12[%175, %c0_51] : memref<8x128xf32, #tpu.memory_space<vmem>>, vector<1x128xf32>
    tpu.vector_store %arg12[%175, %c0_51], %174 {strides = array<i32>} : memref<8x128xf32, #tpu.memory_space<vmem>>, vector<1x128xf32>,
    %c5_i32 = arith.constant 5 : i32
    %177 = arith.index_cast %c5_i32 : i32 to index
    %c0_52 = arith.constant 0 : index
    %178 = vector.load %arg11[%177, %c0_52] : memref<8x512xf32, #tpu.memory_space<vmem>>, vector<1x512xf32>
    %179 = arith.truncf %174 : vector<1x128xf32> to vector<1x128xbf16>
    %c0_53 = arith.constant 0 : index
    %c0_54 = arith.constant 0 : index
    %180 = vector.load %arg4[%c0_53, %c0_54] : memref<128x512xbf16, #tpu.memory_space<vmem>>, vector<128x512xbf16>
    %cst_55 = arith.constant dense<0.000000e+00> : vector<1x512xf32>
    %181 = tpu.matmul %179, %180, %cst_55 {dimension_numbers = #tpu.dot_dimension_numbers<[1], [0], [0], [1], [0, 0, 1, 1], [], []>} : vector<1x128xbf16>, vector<128x512xbf16>, vector<1x512xf32> -> vector<1x512xf32>
    %182 = arith.addf %178, %181 : vector<1x512xf32>
    %183 = vector.extract_strided_slice %182 {offsets = [0, 0], sizes = [1, 128], strides = [1, 1]} : vector<1x512xf32> to vector<1x128xf32>
    %184 = arith.negf %183 : vector<1x128xf32>
    %185 = math.exp %184 : vector<1x128xf32>
    %cst_56 = arith.constant 1.000000e+00 : f32
    %186 = vector.broadcast %cst_56 : f32 to vector<1x128xf32>
    %187 = arith.addf %186, %185 : vector<1x128xf32>
    %188 = arith.divf %186, %187 : vector<1x128xf32>
    %189 = vector.extract_strided_slice %182 {offsets = [0, 128], sizes = [1, 128], strides = [1, 1]} : vector<1x512xf32> to vector<1x128xf32>
    %190 = arith.negf %189 : vector<1x128xf32>
    %191 = math.exp %190 : vector<1x128xf32>
    %cst_57 = arith.constant 1.000000e+00 : f32
    %192 = vector.broadcast %cst_57 : f32 to vector<1x128xf32>
    %193 = arith.addf %192, %191 : vector<1x128xf32>
    %194 = arith.divf %192, %193 : vector<1x128xf32>
    %195 = vector.extract_strided_slice %182 {offsets = [0, 256], sizes = [1, 128], strides = [1, 1]} : vector<1x512xf32> to vector<1x128xf32>
    %196 = math.tanh %195 : vector<1x128xf32>
    %197 = vector.extract_strided_slice %182 {offsets = [0, 384], sizes = [1, 128], strides = [1, 1]} : vector<1x512xf32> to vector<1x128xf32>
    %198 = arith.negf %197 : vector<1x128xf32>
    %199 = math.exp %198 : vector<1x128xf32>
    %cst_58 = arith.constant 1.000000e+00 : f32
    %200 = vector.broadcast %cst_58 : f32 to vector<1x128xf32>
    %201 = arith.addf %200, %199 : vector<1x128xf32>
    %202 = arith.divf %200, %201 : vector<1x128xf32>
    %203 = arith.mulf %194, %172 : vector<1x128xf32>
    %204 = arith.mulf %188, %196 : vector<1x128xf32>
    %205 = arith.addf %203, %204 : vector<1x128xf32>
    %206 = math.tanh %205 : vector<1x128xf32>
    %207 = arith.mulf %202, %206 : vector<1x128xf32>
    %208 = arith.index_cast %c5_i32 : i32 to index
    %c0_59 = arith.constant 0 : index
    %209 = vector.load %arg12[%208, %c0_59] : memref<8x128xf32, #tpu.memory_space<vmem>>, vector<1x128xf32>
    tpu.vector_store %arg12[%208, %c0_59], %207 {strides = array<i32>} : memref<8x128xf32, #tpu.memory_space<vmem>>, vector<1x128xf32>,
    %c6_i32 = arith.constant 6 : i32
    %210 = arith.index_cast %c6_i32 : i32 to index
    %c0_60 = arith.constant 0 : index
    %211 = vector.load %arg11[%210, %c0_60] : memref<8x512xf32, #tpu.memory_space<vmem>>, vector<1x512xf32>
    %212 = arith.truncf %207 : vector<1x128xf32> to vector<1x128xbf16>
    %c0_61 = arith.constant 0 : index
    %c0_62 = arith.constant 0 : index
    %213 = vector.load %arg4[%c0_61, %c0_62] : memref<128x512xbf16, #tpu.memory_space<vmem>>, vector<128x512xbf16>
    %cst_63 = arith.constant dense<0.000000e+00> : vector<1x512xf32>
    %214 = tpu.matmul %212, %213, %cst_63 {dimension_numbers = #tpu.dot_dimension_numbers<[1], [0], [0], [1], [0, 0, 1, 1], [], []>} : vector<1x128xbf16>, vector<128x512xbf16>, vector<1x512xf32> -> vector<1x512xf32>
    %215 = arith.addf %211, %214 : vector<1x512xf32>
    %216 = vector.extract_strided_slice %215 {offsets = [0, 0], sizes = [1, 128], strides = [1, 1]} : vector<1x512xf32> to vector<1x128xf32>
    %217 = arith.negf %216 : vector<1x128xf32>
    %218 = math.exp %217 : vector<1x128xf32>
    %cst_64 = arith.constant 1.000000e+00 : f32
    %219 = vector.broadcast %cst_64 : f32 to vector<1x128xf32>
    %220 = arith.addf %219, %218 : vector<1x128xf32>
    %221 = arith.divf %219, %220 : vector<1x128xf32>
    %222 = vector.extract_strided_slice %215 {offsets = [0, 128], sizes = [1, 128], strides = [1, 1]} : vector<1x512xf32> to vector<1x128xf32>
    %223 = arith.negf %222 : vector<1x128xf32>
    %224 = math.exp %223 : vector<1x128xf32>
    %cst_65 = arith.constant 1.000000e+00 : f32
    %225 = vector.broadcast %cst_65 : f32 to vector<1x128xf32>
    %226 = arith.addf %225, %224 : vector<1x128xf32>
    %227 = arith.divf %225, %226 : vector<1x128xf32>
    %228 = vector.extract_strided_slice %215 {offsets = [0, 256], sizes = [1, 128], strides = [1, 1]} : vector<1x512xf32> to vector<1x128xf32>
    %229 = math.tanh %228 : vector<1x128xf32>
    %230 = vector.extract_strided_slice %215 {offsets = [0, 384], sizes = [1, 128], strides = [1, 1]} : vector<1x512xf32> to vector<1x128xf32>
    %231 = arith.negf %230 : vector<1x128xf32>
    %232 = math.exp %231 : vector<1x128xf32>
    %cst_66 = arith.constant 1.000000e+00 : f32
    %233 = vector.broadcast %cst_66 : f32 to vector<1x128xf32>
    %234 = arith.addf %233, %232 : vector<1x128xf32>
    %235 = arith.divf %233, %234 : vector<1x128xf32>
    %236 = arith.mulf %227, %205 : vector<1x128xf32>
    %237 = arith.mulf %221, %229 : vector<1x128xf32>
    %238 = arith.addf %236, %237 : vector<1x128xf32>
    %239 = math.tanh %238 : vector<1x128xf32>
    %240 = arith.mulf %235, %239 : vector<1x128xf32>
    %241 = arith.index_cast %c6_i32 : i32 to index
    %c0_67 = arith.constant 0 : index
    %242 = vector.load %arg12[%241, %c0_67] : memref<8x128xf32, #tpu.memory_space<vmem>>, vector<1x128xf32>
    tpu.vector_store %arg12[%241, %c0_67], %240 {strides = array<i32>} : memref<8x128xf32, #tpu.memory_space<vmem>>, vector<1x128xf32>,
    %c7_i32 = arith.constant 7 : i32
    %243 = arith.index_cast %c7_i32 : i32 to index
    %c0_68 = arith.constant 0 : index
    %244 = vector.load %arg11[%243, %c0_68] : memref<8x512xf32, #tpu.memory_space<vmem>>, vector<1x512xf32>
    %245 = arith.truncf %240 : vector<1x128xf32> to vector<1x128xbf16>
    %c0_69 = arith.constant 0 : index
    %c0_70 = arith.constant 0 : index
    %246 = vector.load %arg4[%c0_69, %c0_70] : memref<128x512xbf16, #tpu.memory_space<vmem>>, vector<128x512xbf16>
    %cst_71 = arith.constant dense<0.000000e+00> : vector<1x512xf32>
    %247 = tpu.matmul %245, %246, %cst_71 {dimension_numbers = #tpu.dot_dimension_numbers<[1], [0], [0], [1], [0, 0, 1, 1], [], []>} : vector<1x128xbf16>, vector<128x512xbf16>, vector<1x512xf32> -> vector<1x512xf32>
    %248 = arith.addf %244, %247 : vector<1x512xf32>
    %249 = vector.extract_strided_slice %248 {offsets = [0, 0], sizes = [1, 128], strides = [1, 1]} : vector<1x512xf32> to vector<1x128xf32>
    %250 = arith.negf %249 : vector<1x128xf32>
    %251 = math.exp %250 : vector<1x128xf32>
    %cst_72 = arith.constant 1.000000e+00 : f32
    %252 = vector.broadcast %cst_72 : f32 to vector<1x128xf32>
    %253 = arith.addf %252, %251 : vector<1x128xf32>
    %254 = arith.divf %252, %253 : vector<1x128xf32>
    %255 = vector.extract_strided_slice %248 {offsets = [0, 128], sizes = [1, 128], strides = [1, 1]} : vector<1x512xf32> to vector<1x128xf32>
    %256 = arith.negf %255 : vector<1x128xf32>
    %257 = math.exp %256 : vector<1x128xf32>
    %cst_73 = arith.constant 1.000000e+00 : f32
    %258 = vector.broadcast %cst_73 : f32 to vector<1x128xf32>
    %259 = arith.addf %258, %257 : vector<1x128xf32>
    %260 = arith.divf %258, %259 : vector<1x128xf32>
    %261 = vector.extract_strided_slice %248 {offsets = [0, 256], sizes = [1, 128], strides = [1, 1]} : vector<1x512xf32> to vector<1x128xf32>
    %262 = math.tanh %261 : vector<1x128xf32>
    %263 = vector.extract_strided_slice %248 {offsets = [0, 384], sizes = [1, 128], strides = [1, 1]} : vector<1x512xf32> to vector<1x128xf32>
    %264 = arith.negf %263 : vector<1x128xf32>
    %265 = math.exp %264 : vector<1x128xf32>
    %cst_74 = arith.constant 1.000000e+00 : f32
    %266 = vector.broadcast %cst_74 : f32 to vector<1x128xf32>
    %267 = arith.addf %266, %265 : vector<1x128xf32>
    %268 = arith.divf %266, %267 : vector<1x128xf32>
    %269 = arith.mulf %260, %238 : vector<1x128xf32>
    %270 = arith.mulf %254, %262 : vector<1x128xf32>
    %271 = arith.addf %269, %270 : vector<1x128xf32>
    %272 = math.tanh %271 : vector<1x128xf32>
    %273 = arith.mulf %268, %272 : vector<1x128xf32>
    %274 = arith.index_cast %c7_i32 : i32 to index
    %c0_75 = arith.constant 0 : index
    %275 = vector.load %arg12[%274, %c0_75] : memref<8x128xf32, #tpu.memory_space<vmem>>, vector<1x128xf32>
    tpu.vector_store %arg12[%274, %c0_75], %273 {strides = array<i32>} : memref<8x128xf32, #tpu.memory_space<vmem>>, vector<1x128xf32>,
    %c8_i32 = arith.constant 8 : i32
    %c0_76 = arith.constant 0 : index
    %c0_77 = arith.constant 0 : index
    %276 = vector.load %arg9[%c0_76, %c0_77] : memref<1x128xf32, #tpu.memory_space<vmem>>, vector<1x128xf32>
    tpu.vector_store %arg9[%c0_76, %c0_77], %273 {strides = array<i32>} : memref<1x128xf32, #tpu.memory_space<vmem>>, vector<1x128xf32>,
    %c0_78 = arith.constant 0 : index
    %c0_79 = arith.constant 0 : index
    %277 = vector.load %arg10[%c0_78, %c0_79] : memref<1x128xf32, #tpu.memory_space<vmem>>, vector<1x128xf32>
    tpu.vector_store %arg10[%c0_78, %c0_79], %271 {strides = array<i32>} : memref<1x128xf32, #tpu.memory_space<vmem>>, vector<1x128xf32>,
    %c0_80 = arith.constant 0 : index
    %c0_81 = arith.constant 0 : index
    %278 = vector.load %arg12[%c0_80, %c0_81] : memref<8x128xf32, #tpu.memory_space<vmem>>, vector<8x128xf32>
    %279 = arith.truncf %278 : vector<8x128xf32> to vector<8x128xbf16>
    %c0_82 = arith.constant 0 : index
    %c0_83 = arith.constant 0 : index
    %280 = vector.load %arg6[%c0_82, %c0_83] : memref<128x128xbf16, #tpu.memory_space<vmem>>, vector<128x128xbf16>
    %cst_84 = arith.constant dense<0.000000e+00> : vector<8x128xf32>
    %281 = tpu.matmul %279, %280, %cst_84 {dimension_numbers = #tpu.dot_dimension_numbers<[1], [0], [0], [1], [0, 0, 1, 1], [], []>} : vector<8x128xbf16>, vector<128x128xbf16>, vector<8x128xf32> -> vector<8x128xf32>
    %c0_85 = arith.constant 0 : index
    %c0_86 = arith.constant 0 : index
    %282 = vector.load %arg7[%c0_85, %c0_86] : memref<1x128xf32, #tpu.memory_space<vmem>>, vector<1x128xf32>
    %283 = vector.broadcast %282 : vector<1x128xf32> to vector<8x128xf32>
    %284 = arith.addf %281, %283 : vector<8x128xf32>
    %cst_87 = arith.constant dense<0xFF800000> : vector<8xf32>
    %285 = vector.multi_reduction <maximumf>, %284, %cst_87 [1] : vector<8x128xf32> to vector<8xf32>
    %286 = vector.shape_cast %285 : vector<8xf32> to vector<8x1xf32>
    %287 = vector.broadcast %286 : vector<8x1xf32> to vector<8x128xf32>
    %288 = arith.subf %284, %287 : vector<8x128xf32>
    %289 = math.exp %288 : vector<8x128xf32>
    %cst_88 = arith.constant dense<0.000000e+00> : vector<8xf32>
    %290 = vector.multi_reduction <add>, %289, %cst_88 [1] : vector<8x128xf32> to vector<8xf32>
    %291 = vector.shape_cast %290 : vector<8xf32> to vector<8x1xf32>
    %292 = math.log %291 : vector<8x1xf32>
    %293 = arith.addf %286, %292 : vector<8x1xf32>
    %294 = vector.broadcast %293 : vector<8x1xf32> to vector<8x128xf32>
    %295 = arith.subf %284, %294 : vector<8x128xf32>
    %c0_89 = arith.constant 0 : index
    %c0_90 = arith.constant 0 : index
    %296 = vector.load %arg8[%c0_89, %c0_90] : memref<8x128xf32, #tpu.memory_space<vmem>>, vector<8x128xf32>
    tpu.vector_store %arg8[%c0_89, %c0_90], %295 {strides = array<i32>} : memref<8x128xf32, #tpu.memory_space<vmem>>, vector<8x128xf32>,
    return
  }
}

</mosaic_0001>

<bundles_post_ra>
// kernel: tpu_custom_call.1
= control target key start
LH: loop header
LB: loop body
LE: loop exit
PB: predicated region body
PF: predicated region fallthrough
CT: control target
= control target key end

     0   :  { %16 = vsyncpa [#allocation5], 0  ;;  %s4633_s0 = inlined_call_operand.hbm [shape: f32[8,128], index: 0, kind: input, shape index: {}]   ;;  %s4634_s1 = inlined_call_operand.vmem [shape: f32[1,128], index: 1, kind: input, shape index: {}]   ;;  %s4635_s2 = inlined_call_operand.vmem [shape: f32[1,128], index: 2, kind: input, shape index: {}]   ;;  %s4636_s3 = inlined_call_operand.hbm [shape: bf16[128,512], index: 3, kind: input, shape index: {}]   ;;  %s4637_s4 = inlined_call_operand.hbm [shape: bf16[128,512], index: 4, kind: input, shape index: {}]   ;;  %s4638_s5 = inlined_call_operand.vmem [shape: f32[1,512], index: 5, kind: input, shape index: {}]   ;;  %s4639_s6 = inlined_call_operand.hbm [shape: bf16[128,128], index: 6, kind: input, shape index: {}]   ;;  %s4640_s7 = inlined_call_operand.vmem [shape: f32[1,128], index: 7, kind: input, shape index: {}]   ;;  %s4641_s8 = inlined_call_operand.hbm [shape: f32[8,128], index: 8, kind: output, shape index: {0}]   ;;  %s4642_s9 = inlined_call_operand.hbm [shape: f32[1,128], index: 9, kind: output, shape index: {1}]   ;;  %s4643_s10 = inlined_call_operand.hbm [shape: f32[1,128], index: 10, kind: output, shape index: {2}]  }
   0x1   :  { %17 = vsyncpa [#allocation8], 0 }
   0x2   :  { %18 = vsyncpa [#allocation11], 0 }
   0x3   :  { %19 = vsyncpa [#allocation6], 0 }
   0x4   :  { %20 = vsyncpa [#allocation14], 0  ;;  %s4074_s13 = smov [#allocation7]  }
   0x5   :  { %s40_s14 = sshll.u32 %s4074_s13, 4  ;;  %s41_s14 = int_to_ptr.vmem [resolvable:$true] %s40_s14 }
   0x6   :  { %s3932_s15 = scalar_lea.vmem %s41_s14, 4096  ;;  %p3937_p1 = scmp.lt.s32.totalorder %s41_s14, %s41_s14 }
   0x7   :  { %p3933_p0 = scmp.ne.s32.totalorder %s41_s14, %s3932_s15  ;;  %p3938_p2 = scmp.lt.s32.totalorder %s3932_s15, %s3932_s15 }
   0x9   :  { %p3939_p3 = por %p3938_p2, %p3937_p1 }
   0xb   :  { %p3940_p4 = pnand %p3939_p3, %p3933_p0 }
   0xd   :  { %3943 = shalt.err (!%p3940_p4)
}
   0xe   :  { %s4075_s16 = smov 256   ;;  %s4076_s17 = smov 16  }
   0xf   :  { %46 = dma.hbm_to_vmem [thread:$0]  %s4636_s3, 4096, %s41_s14, [#allocation8], %s4075_s16, %s4075_s16, %s4076_s17  }
  0x10   :  { %s4077_s20 = smov [#allocation4]   ;;  %s4078_s22 = smov [#allocation9]  }
  0x11   :  { %s27_s21 = sshll.u32 %s4077_s20, 4  ;;  %s52_s23 = sshll.u32 %s4078_s22, 4  ;;  %s28_s21 = int_to_ptr.vmem [resolvable:$true] %s27_s21  ;;  %s53_s23 = int_to_ptr.vmem [resolvable:$true] %s52_s23 }
  0x12   :  { %s3952_s24 = scalar_lea.vmem %s28_s21, 128  ;;  %p3957_p6 = scmp.lt.s32.totalorder %s28_s21, %s28_s21 }
  0x13   :  { %p3953_p5 = scmp.ne.s32.totalorder %s28_s21, %s3952_s24  ;;  %p3958_p7 = scmp.lt.s32.totalorder %s3952_s24, %s3952_s24 }
  0x15   :  { %p3959_p8 = por %p3958_p7, %p3957_p6 }
  0x17   :  { %p3960_p9 = pnand %p3959_p8, %p3953_p5 }
  0x19   :  { %3963 = shalt.err (!%p3960_p9)
}
  0x1a   :  { %30 = dma.hbm_to_vmem [thread:$0]  %s4633_s0, 128, %s28_s21, [#allocation5]  }
  0x1b   :  { %s3972_s27 = scalar_lea.vmem %s53_s23, 4096  ;;  %p3977_p11 = scmp.lt.s32.totalorder %s53_s23, %s53_s23 }
  0x1c   :  { %p3973_p10 = scmp.ne.s32.totalorder %s53_s23, %s3972_s27  ;;  %p3978_p12 = scmp.lt.s32.totalorder %s3972_s27, %s3972_s27 }
  0x1e   :  { %p3979_p13 = por %p3978_p12, %p3977_p11 }
  0x20   :  { %p3980_p0 = pnand %p3979_p13, %p3973_p10 }
  0x22   :  { %3983 = shalt.err (!%p3980_p0)
}
  0x23   :  { %58 = dma.hbm_to_vmem [thread:$0]  %s4637_s4, 4096, %s53_s23, [#allocation8], %s4075_s16, %s4075_s16, %s4076_s17  }
  0x24   :  { %s4079_s29 = smov [#allocation10]  }
  0x25   :  { %s66_s30 = sshll.u32 %s4079_s29, 4  ;;  %s67_s30 = int_to_ptr.vmem [resolvable:$true] %s66_s30 }
  0x26   :  { %s3992_s11 = scalar_lea.vmem %s67_s30, 1024  ;;  %p3997_p2 = scmp.lt.s32.totalorder %s67_s30, %s67_s30 }
  0x27   :  { %p3993_p1 = scmp.ne.s32.totalorder %s67_s30, %s3992_s11  ;;  %p3998_p3 = scmp.lt.s32.totalorder %s3992_s11, %s3992_s11 }
  0x29   :  { %p3999_p4 = por %p3998_p3, %p3997_p2 }
  0x2b   :  { %p4000_p5 = pnand %p3999_p4, %p3993_p1 }
  0x2d   :  { %4003 = shalt.err (!%p4000_p5)
}
  0x2e   :  { %s4080_s0 = smov 64   ;;  %s4081_s12 = smov 4  }
  0x2f   :  { %72 = dma.hbm_to_vmem [thread:$0]  %s4639_s6, 1024, %s67_s30, [#allocation11], %s4080_s0, %s4080_s0, %s4081_s12  }
  0x30   :  { %4064 = dma.done.wait [#allocation5], 128  }
  0x31   :  { %4065 = vsyncadd [#allocation5], 4294967168 }
  0x32   :  { %4066 = dma.done.wait [#allocation8], 8192  }
  0x33   :  { %4067 = vsyncadd [#allocation8], 4294959104 }
  0x34   :  { %4068 = dma.done.wait [#allocation11], 1024  }
  0x35   :  { %4069 = vsyncadd [#allocation11], 4294966272  ;;  %v4082_v0 = vmov 0   ;;  %v3640_v1 = vld [vmem:[#allocation7 + $0xe4] ss:$16 sps:$4 sm:$0xff]   ;;  %v88_v29 = vld [vmem:[#allocation4] sm:$0xff] }
  0x36   :  { %337 = vmatprep.mubr.bf16.mxu0 %v4082_v0  ;;  %378 = vmatprep.mubr.bf16.mxu1 %v4082_v0  ;;  %v3642_v2 = vld [vmem:[#allocation7 + $0xec] ss:$16 sps:$4 sm:$0xff]   ;;  %v3644_v3 = vld [vmem:[#allocation7 + $0xe0] ss:$16 sps:$4 sm:$0xff]   ;;  %v3645_v4 = vld [vmem:[#allocation7 + $0xe8] ss:$16 sps:$4 sm:$0xff]  }
  0x37   :  { %305 = vmatprep.subr.bf16.mxu0 %v3640_v1  ;;  %346 = vmatprep.subr.bf16.mxu1 %v3642_v2  ;;  %v3646_v5 = vld [vmem:[#allocation7 + $0xc4] ss:$16 sps:$4 sm:$0xff]   ;;  %v3648_v6 = vld [vmem:[#allocation7 + $0xcc] ss:$16 sps:$4 sm:$0xff]   ;;  %v3650_v7 = vld [vmem:[#allocation7 + $0xc0] ss:$16 sps:$4 sm:$0xff]  }
  0x38   :  { %306 = vmatpush1.bf16.msra.mxu0 %v3644_v3  ;;  %347 = vmatpush1.bf16.msra.mxu1 %v3645_v4  ;;  %v3651_v8 = vld [vmem:[#allocation7 + $0xc8] ss:$16 sps:$4 sm:$0xff]   ;;  %v3652_v9 = vld [vmem:[#allocation7 + $0xa4] ss:$16 sps:$4 sm:$0xff]   ;;  %v3654_v10 = vld [vmem:[#allocation7 + $0xac] ss:$16 sps:$4 sm:$0xff]  }
  0x39   :  { %307 = vmatprep.subr.bf16.mxu0 %v3646_v5  ;;  %348 = vmatprep.subr.bf16.mxu1 %v3648_v6  ;;  %v3656_v11 = vld [vmem:[#allocation7 + $0xa0] ss:$16 sps:$4 sm:$0xff]   ;;  %v3657_v12 = vld [vmem:[#allocation7 + $0xa8] ss:$16 sps:$4 sm:$0xff]   ;;  %v3658_v13 = vld [vmem:[#allocation7 + $0x84] ss:$16 sps:$4 sm:$0xff]  }
  0x3a   :  { %v3660_v14 = vld [vmem:[#allocation7 + $0x8c] ss:$16 sps:$4 sm:$0xff]   ;;  %v3662_v15 = vld [vmem:[#allocation7 + $0x80] ss:$16 sps:$4 sm:$0xff]   ;;  %v3663_v16 = vld [vmem:[#allocation7 + $0x88] ss:$16 sps:$4 sm:$0xff]  }
  0x3b   :  { %v3664_v17 = vld [vmem:[#allocation7 + $0x64] ss:$16 sps:$4 sm:$0xff]   ;;  %v3666_v18 = vld [vmem:[#allocation7 + $0x6c] ss:$16 sps:$4 sm:$0xff]   ;;  %v3668_v19 = vld [vmem:[#allocation7 + $0x60] ss:$16 sps:$4 sm:$0xff]  }
  0x3c   :  { %308 = vmatpush1.bf16.msra.mxu0 %v3650_v7  ;;  %349 = vmatpush1.bf16.msra.mxu1 %v3651_v8  ;;  %v3669_v20 = vld [vmem:[#allocation7 + $0x68] ss:$16 sps:$4 sm:$0xff]   ;;  %v3670_v21 = vld [vmem:[#allocation7 + $0x44] ss:$16 sps:$4 sm:$0xff]   ;;  %v3672_v22 = vld [vmem:[#allocation7 + $0x4c] ss:$16 sps:$4 sm:$0xff]   ;;  %v125_v7 = vlaneseq }
  0x3d   :  { %309 = vmatprep.subr.bf16.mxu0 %v3652_v9  ;;  %350 = vmatprep.subr.bf16.mxu1 %v3654_v10  ;;  %v3674_v23 = vld [vmem:[#allocation7 + $0x40] ss:$16 sps:$4 sm:$0xff]   ;;  %v3675_v24 = vld [vmem:[#allocation7 + $0x48] ss:$16 sps:$4 sm:$0xff]   ;;  %v3676_v25 = vld [vmem:[#allocation7 + $0x24] ss:$16 sps:$4 sm:$0xff]  }
  0x3e   :  { %v3678_v26 = vld [vmem:[#allocation7 + $0x2c] ss:$16 sps:$4 sm:$0xff]   ;;  %v3680_v27 = vld [vmem:[#allocation7 + $0x20] ss:$16 sps:$4 sm:$0xff]   ;;  %v3681_v28 = vld [vmem:[#allocation7 + $0x28] ss:$16 sps:$4 sm:$0xff]  }
  0x3f   :  { %v3682_v30 = vld [vmem:[#allocation7 + $0x4] ss:$16 sps:$4 sm:$0xff]   ;;  %v3684_v31 = vld [vmem:[#allocation7 + $0xc] ss:$16 sps:$4 sm:$0xff]   ;;  %v3686_v32 = vld [vmem:[#allocation7] ss:$16 sps:$4 sm:$0xff]  }
  0x40   :  { %310 = vmatpush1.bf16.msra.mxu0 %v3656_v11  ;;  %351 = vmatpush1.bf16.msra.mxu1 %v3657_v12  ;;  %v89_v33 = vmax.f32 %v88_v29, 0.0  ;;  %v3687_v34 = vld [vmem:[#allocation7 + $0x8] ss:$16 sps:$4 sm:$0xff]   ;;  %v4158_v35 = vld [vmem:[#allocation9 + $0xe4] ss:$16 sps:$4 sm:$0xff]   ;;  %v126_v8 = vshrl.u32 %v125_v7, 7 }
  0x41   :  { %311 = vmatprep.subr.bf16.mxu0 %v3658_v13  ;;  %352 = vmatprep.subr.bf16.mxu1 %v3660_v14  ;;  %v4160_v36 = vld [vmem:[#allocation9 + $0xec] ss:$16 sps:$4 sm:$0xff]   ;;  %v4162_v38 = vld [vmem:[#allocation9 + $0xe0] ss:$16 sps:$4 sm:$0xff]   ;;  %v4164_v39 = vld [vmem:[#allocation9 + $0xe8] ss:$16 sps:$4 sm:$0xff]  }
  0x42   :  { %v90_v37 = vpack.c.bf16 %v89_v33, %v89_v33  ;;  %v4168_v40 = vld [vmem:[#allocation9 + $0xc4] ss:$16 sps:$4 sm:$0xff]   ;;  %v4170_v41 = vld [vmem:[#allocation9 + $0xcc] ss:$16 sps:$4 sm:$0xff]   ;;  %v4172_v42 = vld [vmem:[#allocation9 + $0xc0] ss:$16 sps:$4 sm:$0xff]  }
  0x43   :  { %v4176_v43 = vld [vmem:[#allocation9 + $0xc8] ss:$16 sps:$4 sm:$0xff]   ;;  %v4180_v44 = vld [vmem:[#allocation9 + $0xa4] ss:$16 sps:$4 sm:$0xff]   ;;  %v4182_v45 = vld [vmem:[#allocation9 + $0xac] ss:$16 sps:$4 sm:$0xff]  }
  0x44   :  { %312 = vmatpush1.bf16.msra.mxu0 %v3662_v15  ;;  %353 = vmatpush1.bf16.msra.mxu1 %v3663_v16  ;;  %v4186_v46 = vld [vmem:[#allocation9 + $0xa0] ss:$16 sps:$4 sm:$0xff]   ;;  %v4190_v47 = vld [vmem:[#allocation9 + $0xa8] ss:$16 sps:$4 sm:$0xff]   ;;  %v4194_v48 = vld [vmem:[#allocation9 + $0x84] ss:$16 sps:$4 sm:$0xff]  }
  0x45   :  { %313 = vmatprep.subr.bf16.mxu0 %v3664_v17  ;;  %354 = vmatprep.subr.bf16.mxu1 %v3666_v18  ;;  %v4196_v49 = vld [vmem:[#allocation9 + $0x8c] ss:$16 sps:$4 sm:$0xff]   ;;  %v4198_v50 = vld [vmem:[#allocation9 + $0x80] ss:$16 sps:$4 sm:$0xff]   ;;  %v4200_v51 = vld [vmem:[#allocation9 + $0x88] ss:$16 sps:$4 sm:$0xff]  }
  0x46   :  { %v4202_v52 = vld [vmem:[#allocation9 + $0x64] ss:$16 sps:$4 sm:$0xff]   ;;  %v4204_v53 = vld [vmem:[#allocation9 + $0x6c] ss:$16 sps:$4 sm:$0xff]   ;;  %v4210_v54 = vld [vmem:[#allocation9 + $0x60] ss:$16 sps:$4 sm:$0xff]  }
  0x47   :  { %v4212_v55 = vld [vmem:[#allocation9 + $0x68] ss:$16 sps:$4 sm:$0xff]   ;;  %v4214_v56 = vld [vmem:[#allocation9 + $0x44] ss:$16 sps:$4 sm:$0xff]   ;;  %v4216_v57 = vld [vmem:[#allocation9 + $0x4c] ss:$16 sps:$4 sm:$0xff]  }
  0x48   :  { %314 = vmatpush1.bf16.msra.mxu0 %v3668_v19  ;;  %355 = vmatpush1.bf16.msra.mxu1 %v3669_v20  ;;  %v4222_v58 = vld [vmem:[#allocation9 + $0x40] ss:$16 sps:$4 sm:$0xff]   ;;  %v4224_v59 = vld [vmem:[#allocation9 + $0x48] ss:$16 sps:$4 sm:$0xff]   ;;  %v4226_v60 = vld [vmem:[#allocation9 + $0x24] ss:$16 sps:$4 sm:$0xff]  }
  0x49   :  { %315 = vmatprep.subr.bf16.mxu0 %v3670_v21  ;;  %356 = vmatprep.subr.bf16.mxu1 %v3672_v22  ;;  %v4228_v61 = vld [vmem:[#allocation9 + $0x2c] ss:$16 sps:$4 sm:$0xff]   ;;  %v4234_v62 = vld [vmem:[#allocation9 + $0x20] ss:$16 sps:$4 sm:$0xff]   ;;  %v4236_v63 = vld [vmem:[#allocation9 + $0x28] ss:$16 sps:$4 sm:$0xff]  }
  0x4a   :  { %v4238_v1 = vld [vmem:[#allocation9 + $0x4] ss:$16 sps:$4 sm:$0xff]   ;;  %v4240_v2 = vld [vmem:[#allocation9 + $0xc] ss:$16 sps:$4 sm:$0xff]   ;;  %v4248_v3 = vld [vmem:[#allocation9] ss:$16 sps:$4 sm:$0xff]  }
  0x4b   :  { %v4250_v4 = vld [vmem:[#allocation9 + $0x8] ss:$16 sps:$4 sm:$0xff]   ;;  %v391_v5 = vld [vmem:[%s4634_s1] sm:$0x1]  ;;  %v127_v9 = vsub.s32 0, %v126_v8  ;;  %v135_v10 = vsub.s32 2, %v126_v8 }
  0x4c   :  { %316 = vmatpush1.bf16.msra.mxu0 %v3674_v23  ;;  %357 = vmatpush1.bf16.msra.mxu1 %v3675_v24  ;;  %v394_v6 = vpack.c.bf16 %v391_v5, %v391_v5  ;;  %v123_v11 = vld [vmem:[%s4638_s5] sm:$0xf]  ;;  %v131_v12 = vsub.s32 1, %v126_v8  ;;  %v139_v13 = vsub.s32 3, %v126_v8  ;;  %vm4085_vm0 = vmmov 0   ;;  %s4086_s18 = smov [#allocation13]  }
  0x4d   :  { %317 = vmatprep.subr.bf16.mxu0 %v3676_v25  ;;  %358 = vmatprep.subr.bf16.mxu1 %v3678_v26  ;;  %v128_v14 = vrot.slane %v123_v11, %v127_v9  ;;  %v136_v15 = vrot.slane %v123_v11, %v135_v10  ;;  %s3247_s19 = sshll.u32 %s4086_s18, 4  ;;  %s3248_s19 = int_to_ptr.vmem [resolvable:$true] %s3247_s19 }
  0x4e   :  { %v132_v16 = vrot.slane %v123_v11, %v131_v12  ;;  %v140_v17 = vrot.slane %v123_v11, %v139_v13  ;;  %s4004_s20 = scalar_lea.vmem %s3248_s19, 16  ;;  %s4008_s21 = scalar_lea.vmem %s3248_s19, 32 }
  0x4f   :  { %p4005_p6 = scmp.ne.s32.totalorder %s3248_s19, %s4004_s20  ;;  %p4009_p7 = scmp.lt.s32.totalorder %s3248_s19, %s3248_s19 }
  0x50   :  { %318 = vmatpush1.bf16.msra.mxu0 %v3680_v27  ;;  %359 = vmatpush1.bf16.msra.mxu1 %v3681_v28  ;;  %p4010_p8 = scmp.lt.s32.totalorder %s4008_s21, %s4004_s20 }
  0x51   :  { %319 = vmatprep.subr.bf16.mxu0 %v3682_v30  ;;  %360 = vmatprep.subr.bf16.mxu1 %v3684_v31  ;;  %v4083_v30 = vmov 1966171168  }
  0x52   :  { %v676_v31 = vunpack.c.l.s4 %v4083_v30  ;;  %p4011_p9 = por %p4010_p8, %p4009_p7 }
  0x54   :  { %320 = vmatpush1.bf16.msra.mxu0 %v3686_v32  ;;  %361 = vmatpush1.bf16.msra.mxu1 %v3687_v34  ;;  %v677_v32 = vunpack.c.0.s8 %v676_v31  ;;  %v392_v31 = vld [vmem:[%s4635_s2] sm:$0x1]  ;;  %p4012_p10 = pnand %p4011_p9, %p4005_p6 }
  0x55   :  { %587 = vmatprep.subr.bf16.mxu0 %v4158_v35  ;;  %628 = vmatprep.subr.bf16.mxu1 %v4160_v36 }
  0x57   :  { %338 = vmatmul.mubr.bf16.vlgmr.msra.gmra.mxu0 %v90_v37  ;;  %379 = vmatmul.mubr.bf16.vlgmr.msra.gmra.mxu1 %v90_v37  ;;  %v4298_v37 = vsub.s32 %v677_v32, %v126_v8 }
  0x58   :  { %588 = vmatpush1.bf16.msra.mxu0 %v4162_v38  ;;  %629 = vmatpush1.bf16.msra.mxu1 %v4164_v39 }
  0x59   :  { %589 = vmatprep.subr.bf16.mxu0 %v4168_v40  ;;  %630 = vmatprep.subr.bf16.mxu1 %v4170_v41 }
  0x5a   :  { %619 = vmatprep.mubr.bf16.mxu0 %v4082_v0  ;;  %660 = vmatprep.mubr.bf16.mxu1 %v4082_v0 }
  0x5c   :  { %590 = vmatpush1.bf16.msra.mxu0 %v4172_v42  ;;  %631 = vmatpush1.bf16.msra.mxu1 %v4176_v43 }
  0x5d   :  { %591 = vmatprep.subr.bf16.mxu0 %v4180_v44  ;;  %632 = vmatprep.subr.bf16.mxu1 %v4182_v45 }
  0x60   :  { %592 = vmatpush1.bf16.msra.mxu0 %v4186_v46  ;;  %633 = vmatpush1.bf16.msra.mxu1 %v4190_v47 }
  0x61   :  { %593 = vmatprep.subr.bf16.mxu0 %v4194_v48  ;;  %634 = vmatprep.subr.bf16.mxu1 %v4196_v49 }
  0x64   :  { %594 = vmatpush1.bf16.msra.mxu0 %v4198_v50  ;;  %635 = vmatpush1.bf16.msra.mxu1 %v4200_v51 }
  0x65   :  { %595 = vmatprep.subr.bf16.mxu0 %v4202_v52  ;;  %636 = vmatprep.subr.bf16.mxu1 %v4204_v53 }
  0x68   :  { %596 = vmatpush1.bf16.msra.mxu0 %v4210_v54  ;;  %637 = vmatpush1.bf16.msra.mxu1 %v4212_v55 }
  0x69   :  { %597 = vmatprep.subr.bf16.mxu0 %v4214_v56  ;;  %638 = vmatprep.subr.bf16.mxu1 %v4216_v57 }
  0x6c   :  { %598 = vmatpush1.bf16.msra.mxu0 %v4222_v58  ;;  %639 = vmatpush1.bf16.msra.mxu1 %v4224_v59 }
  0x6d   :  { %599 = vmatprep.subr.bf16.mxu0 %v4226_v60  ;;  %640 = vmatprep.subr.bf16.mxu1 %v4228_v61 }
  0x70   :  { %600 = vmatpush1.bf16.msra.mxu0 %v4234_v62  ;;  %641 = vmatpush1.bf16.msra.mxu1 %v4236_v63 }
  0x71   :  { %601 = vmatprep.subr.bf16.mxu0 %v4238_v1  ;;  %642 = vmatprep.subr.bf16.mxu1 %v4240_v2 }
  0x74   :  { %602 = vmatpush1.bf16.msra.mxu0 %v4248_v3  ;;  %643 = vmatpush1.bf16.msra.mxu1 %v4250_v4 }
  0x75   :  { %926 = vmatprep.subr.bf16.mxu0 %v4158_v35  ;;  %967 = vmatprep.subr.bf16.mxu1 %v4160_v36 }
  0x77   :  { %620 = vmatmul.mubr.bf16.vlgmr.msra.gmra.mxu0 %v394_v6  ;;  %661 = vmatmul.mubr.bf16.vlgmr.msra.gmra.mxu1 %v394_v6 }
  0x78   :  { %927 = vmatpush1.bf16.msra.mxu0 %v4162_v38  ;;  %968 = vmatpush1.bf16.msra.mxu1 %v4164_v39 }
  0x79   :  { %928 = vmatprep.subr.bf16.mxu0 %v4168_v40  ;;  %969 = vmatprep.subr.bf16.mxu1 %v4170_v41 }
  0x7a   :  { %958 = vmatprep.mubr.bf16.mxu0 %v4082_v0  ;;  %999 = vmatprep.mubr.bf16.mxu1 %v4082_v0 }
  0x7c   :  { %929 = vmatpush1.bf16.msra.mxu0 %v4172_v42  ;;  %970 = vmatpush1.bf16.msra.mxu1 %v4176_v43 }
  0x7d   :  { %930 = vmatprep.subr.bf16.mxu0 %v4180_v44  ;;  %971 = vmatprep.subr.bf16.mxu1 %v4182_v45 }
  0x80   :  { %931 = vmatpush1.bf16.msra.mxu0 %v4186_v46  ;;  %972 = vmatpush1.bf16.msra.mxu1 %v4190_v47 }
  0x81   :  { %932 = vmatprep.subr.bf16.mxu0 %v4194_v48  ;;  %973 = vmatprep.subr.bf16.mxu1 %v4196_v49 }
  0x84   :  { %933 = vmatpush1.bf16.msra.mxu0 %v4198_v50  ;;  %974 = vmatpush1.bf16.msra.mxu1 %v4200_v51 }
  0x85   :  { %934 = vmatprep.subr.bf16.mxu0 %v4202_v52  ;;  %975 = vmatprep.subr.bf16.mxu1 %v4204_v53 }
  0x88   :  { %935 = vmatpush1.bf16.msra.mxu0 %v4210_v54  ;;  %976 = vmatpush1.bf16.msra.mxu1 %v4212_v55 }
  0x89   :  { %936 = vmatprep.subr.bf16.mxu0 %v4214_v56  ;;  %977 = vmatprep.subr.bf16.mxu1 %v4216_v57 }
  0x8c   :  { %937 = vmatpush1.bf16.msra.mxu0 %v4222_v58  ;;  %978 = vmatpush1.bf16.msra.mxu1 %v4224_v59 }
  0x8d   :  { %938 = vmatprep.subr.bf16.mxu0 %v4226_v60  ;;  %979 = vmatprep.subr.bf16.mxu1 %v4228_v61 }
  0x90   :  { %939 = vmatpush1.bf16.msra.mxu0 %v4234_v62  ;;  %980 = vmatpush1.bf16.msra.mxu1 %v4236_v63 }
  0x91   :  { %940 = vmatprep.subr.bf16.mxu0 %v4238_v1  ;;  %981 = vmatprep.subr.bf16.mxu1 %v4240_v2 }
  0x94   :  { %941 = vmatpush1.bf16.msra.mxu0 %v4248_v3  ;;  %982 = vmatpush1.bf16.msra.mxu1 %v4250_v4 }
  0x95   :  { %1265 = vmatprep.subr.bf16.mxu0 %v4158_v35  ;;  %1306 = vmatprep.subr.bf16.mxu1 %v4160_v36 }
 0x117   :  { %v339_v18 = vpop.f32.mrf.mxu0  ;;  %v380_v19 = vpop.f32.mrf.mxu1 }
 0x118   :  { %v340_v20 = vadd.f32 %v339_v18, %v128_v14  ;;  %v381_v21 = vadd.f32 %v380_v19, %v136_v15 }
 0x119   :  { %v341_v22 = vpop.f32.mrf.mxu0  ;;  %v382_v23 = vpop.f32.mrf.mxu1 }
 0x11a   :  { %387 = vst [vmem:[#allocation2] sm:$0xff] %v340_v20  ;;  %389 = vst [vmem:[#allocation2 + $0x10] sm:$0xff] %v381_v21  ;;  %v342_v24 = vadd.f32 %v341_v22, %v132_v16  ;;  %v383_v25 = vadd.f32 %v382_v23, %v140_v17 }
 0x11b   :  { %v343_v26 = vpop.f32.mrf.mxu0  ;;  %v384_v27 = vpop.f32.mrf.mxu1 }
 0x11c   :  { %388 = vst [vmem:[#allocation2 + $0x8] sm:$0xff] %v342_v24  ;;  %390 = vst [vmem:[#allocation2 + $0x18] sm:$0xff] %v383_v25 }
 0x11d   :  { %v344_v28 = vpop.f32.mrf.mxu0  ;;  %v385_v29 = vpop.f32.mrf.mxu1 }
 0x123   :  { %v393_v18 = vld [vmem:[#allocation2] ss:$8 sm:$0xf] }
 0x137   :  { %v621_v33 = vpop.f32.mrf.mxu0  ;;  %v662_v34 = vpop.f32.mrf.mxu1 }
 0x139   :  { %v623_v5 = vpop.f32.mrf.mxu0  ;;  %v664_v6 = vpop.f32.mrf.mxu1 }
 0x13a   :  { %v673_v7 = vcombine.low %v621_v33, %v623_v5  ;;  %v674_v9 = vcombine.low %v662_v34, %v664_v6 }
 0x13b   :  { %v625_v10 = vpop.f32.mrf.mxu0  ;;  %v666_v11 = vpop.f32.mrf.mxu1 }
 0x13c   :  { %v681_v12 = vrot.slane %v673_v7, %v4298_v37  ;;  %v688_v13 = vrot.slane %v674_v9, %v4298_v37 }
 0x13d   :  { %v626_v14 = vpop.f32.mrf.mxu0  ;;  %v667_v15 = vpop.f32.mrf.mxu1 }
 0x13e   :  { %v689_v16 = vcombine.low %v681_v12, %v688_v13 }
 0x140   :  { %v696_v17 = vrot.slane %v689_v16, %v4298_v37 }
 0x142   :  { %v698_v19 = vadd.f32 %v696_v17, %v393_v18 }
 0x144   :  { %v3339_v20 = vmul.f32 -1.442695, %v698_v19  ;;  %v706_v8 = vrot.slane %v698_v19, 1  ;;  %v717_v22 = vrot.slane %v698_v19, 3  ;;  %v714_v25 = vrot.slane %v698_v19, 2 }
 0x146   :  { %3792 = vpow2.f32 %v3339_v20  ;;  %v3340_v21 = vmul.f32 -1.442695, %v706_v8  ;;  %v3341_v23 = vmul.f32 -1.442695, %v717_v22 }
 0x148   :  { %3794 = vpow2.f32 %v3340_v21 }
 0x149   :  { %3796 = vpow2.f32 %v3341_v23 }
 0x153   :  { %v3793_v24 = vpop.eup %3792 }
 0x154   :  { %v702_v26 = vadd.f32 1.0, %v3793_v24 }
 0x155   :  { %v3795_v27 = vpop.eup %3794 }
 0x156   :  { %3798 = vrcp.f32 %v702_v26  ;;  %v711_v28 = vadd.f32 1.0, %v3795_v27  ;;  %v3797_v29 = vpop.eup %3796 }
 0x157   :  { %3800 = vtanh.f32 %v714_v25  ;;  %v722_v34 = vadd.f32 1.0, %v3797_v29 }
 0x158   :  { %3802 = vrcp.f32 %v711_v28 }
 0x159   :  { %3804 = vrcp.f32 %v722_v34 }
 0x163   :  { %v3799_v30 = vpop.eup %3798 }
 0x164   :  { %v3801_v32 = vpop.eup %3800 }
 0x165   :  { %v3803_v33 = vpop.eup %3802  ;;  %v726_v6 = vmul.f32 %v3801_v32, %v3799_v30 }
 0x166   :  { %v725_v5 = vmul.f32 %v3803_v33, %v392_v31  ;;  %v3805_v9 = vpop.eup %3804 }
 0x168   :  { %v4306_v7 = vadd.f32 %v726_v6, %v725_v5 }
 0x16a   :  { %3806 = vtanh.f32 %v4306_v7 }
 0x177   :  { %v3807_v10 = vpop.eup %3806 }
 0x178   :  { %v729_v11 = vmul.f32 %v3807_v10, %v3805_v9 }
 0x17a   :  { %730 = vst [vmem:[#allocation3] sm:$0x1] %v729_v11  ;;  %v733_v12 = vpack.c.bf16 %v729_v11, %v729_v11 }
 0x17c   :  { %959 = vmatmul.mubr.bf16.vlgmr.msra.gmra.mxu0 %v733_v12  ;;  %1000 = vmatmul.mubr.bf16.vlgmr.msra.gmra.mxu1 %v733_v12 }
 0x17d   :  { %1266 = vmatpush1.bf16.msra.mxu0 %v4162_v38  ;;  %1307 = vmatpush1.bf16.msra.mxu1 %v4164_v39 }
 0x17e   :  { %1267 = vmatprep.subr.bf16.mxu0 %v4168_v40  ;;  %1308 = vmatprep.subr.bf16.mxu1 %v4170_v41 }
 0x17f   :  { %1297 = vmatprep.mubr.bf16.mxu0 %v4082_v0  ;;  %1338 = vmatprep.mubr.bf16.mxu1 %v4082_v0 }
 0x181   :  { %1268 = vmatpush1.bf16.msra.mxu0 %v4172_v42  ;;  %1309 = vmatpush1.bf16.msra.mxu1 %v4176_v43 }
 0x182   :  { %1269 = vmatprep.subr.bf16.mxu0 %v4180_v44  ;;  %1310 = vmatprep.subr.bf16.mxu1 %v4182_v45 }
 0x185   :  { %1270 = vmatpush1.bf16.msra.mxu0 %v4186_v46  ;;  %1311 = vmatpush1.bf16.msra.mxu1 %v4190_v47 }
 0x186   :  { %1271 = vmatprep.subr.bf16.mxu0 %v4194_v48  ;;  %1312 = vmatprep.subr.bf16.mxu1 %v4196_v49 }
 0x189   :  { %1272 = vmatpush1.bf16.msra.mxu0 %v4198_v50  ;;  %1313 = vmatpush1.bf16.msra.mxu1 %v4200_v51 }
 0x18a   :  { %1273 = vmatprep.subr.bf16.mxu0 %v4202_v52  ;;  %1314 = vmatprep.subr.bf16.mxu1 %v4204_v53 }
 0x18d   :  { %1274 = vmatpush1.bf16.msra.mxu0 %v4210_v54  ;;  %1315 = vmatpush1.bf16.msra.mxu1 %v4212_v55 }
 0x18e   :  { %1275 = vmatprep.subr.bf16.mxu0 %v4214_v56  ;;  %1316 = vmatprep.subr.bf16.mxu1 %v4216_v57 }
 0x191   :  { %1276 = vmatpush1.bf16.msra.mxu0 %v4222_v58  ;;  %1317 = vmatpush1.bf16.msra.mxu1 %v4224_v59 }
 0x192   :  { %1277 = vmatprep.subr.bf16.mxu0 %v4226_v60  ;;  %1318 = vmatprep.subr.bf16.mxu1 %v4228_v61 }
 0x195   :  { %1278 = vmatpush1.bf16.msra.mxu0 %v4234_v62  ;;  %1319 = vmatpush1.bf16.msra.mxu1 %v4236_v63 }
 0x196   :  { %1279 = vmatprep.subr.bf16.mxu0 %v4238_v1  ;;  %1320 = vmatprep.subr.bf16.mxu1 %v4240_v2 }
 0x199   :  { %1280 = vmatpush1.bf16.msra.mxu0 %v4248_v3  ;;  %1321 = vmatpush1.bf16.msra.mxu1 %v4250_v4 }
 0x19a   :  { %1604 = vmatprep.subr.bf16.mxu0 %v4158_v35  ;;  %1645 = vmatprep.subr.bf16.mxu1 %v4160_v36  ;;  %v732_v35 = vld [vmem:[#allocation2 + $0x1] ss:$8 sm:$0xf] }
 0x23c   :  { %v960_v13 = vpop.f32.mrf.mxu0  ;;  %v1001_v14 = vpop.f32.mrf.mxu1 }
 0x23e   :  { %v962_v15 = vpop.f32.mrf.mxu0  ;;  %v1003_v16 = vpop.f32.mrf.mxu1 }
 0x23f   :  { %v1012_v17 = vcombine.low %v960_v13, %v962_v15  ;;  %v1013_v18 = vcombine.low %v1001_v14, %v1003_v16 }
 0x240   :  { %v964_v19 = vpop.f32.mrf.mxu0  ;;  %v1005_v20 = vpop.f32.mrf.mxu1 }
 0x241   :  { %v1020_v8 = vrot.slane %v1012_v17, %v4298_v37  ;;  %v1027_v21 = vrot.slane %v1013_v18, %v4298_v37 }
 0x242   :  { %v965_v22 = vpop.f32.mrf.mxu0  ;;  %v1006_v23 = vpop.f32.mrf.mxu1 }
 0x243   :  { %v1028_v24 = vcombine.low %v1020_v8, %v1027_v21 }
 0x245   :  { %v1035_v25 = vrot.slane %v1028_v24, %v4298_v37 }
 0x247   :  { %v1037_v26 = vadd.f32 %v1035_v25, %v732_v35  ;;  %v4391_v35 = vld [vmem:[#allocation9 + $0xe0] ss:$16 sps:$4 sm:$0xff]  }
 0x249   :  { %v3374_v36 = vmul.f32 -1.442695, %v1037_v26  ;;  %v1045_v27 = vrot.slane %v1037_v26, 1  ;;  %v1056_v29 = vrot.slane %v1037_v26, 3  ;;  %v1053_v32 = vrot.slane %v1037_v26, 2 }
 0x24a   :  { %v4393_v26 = vld [vmem:[#allocation9 + $0xe4] ss:$16 sps:$4 sm:$0xff]  }
 0x24b   :  { %3808 = vpow2.f32 %v3374_v36  ;;  %v3375_v28 = vmul.f32 -1.442695, %v1045_v27  ;;  %v3376_v30 = vmul.f32 -1.442695, %v1056_v29  ;;  %v4395_v36 = vld [vmem:[#allocation9 + $0xe8] ss:$16 sps:$4 sm:$0xff]  }
 0x24c   :  { %v4397_v27 = vld [vmem:[#allocation9 + $0xec] ss:$16 sps:$4 sm:$0xff]  }
 0x24d   :  { %3810 = vpow2.f32 %v3375_v28  ;;  %v4399_v28 = vld [vmem:[#allocation9 + $0xc4] ss:$16 sps:$4 sm:$0xff]   ;;  %v4402_v29 = vld [vmem:[#allocation9 + $0xcc] ss:$16 sps:$4 sm:$0xff]  }
 0x24e   :  { %3812 = vpow2.f32 %v3376_v30  ;;  %v4406_v30 = vld [vmem:[#allocation9 + $0xc0] ss:$16 sps:$4 sm:$0xff]  }
 0x258   :  { %v3809_v31 = vpop.eup %3808 }
 0x259   :  { %v1041_v33 = vadd.f32 1.0, %v3809_v31  ;;  %v4410_v31 = vld [vmem:[#allocation9 + $0xc8] ss:$16 sps:$4 sm:$0xff]  }
 0x25a   :  { %v3811_v34 = vpop.eup %3810 }
 0x25b   :  { %3814 = vrcp.f32 %v1041_v33  ;;  %v1050_v5 = vadd.f32 1.0, %v3811_v34  ;;  %v3813_v6 = vpop.eup %3812  ;;  %v4415_v33 = vld [vmem:[#allocation9 + $0xac] ss:$16 sps:$4 sm:$0xff]   ;;  %v4418_v34 = vld [vmem:[#allocation9 + $0xa0] ss:$16 sps:$4 sm:$0xff]  }
 0x25c   :  { %3816 = vtanh.f32 %v1053_v32  ;;  %v1061_v12 = vadd.f32 1.0, %v3813_v6  ;;  %v4412_v32 = vld [vmem:[#allocation9 + $0xa4] ss:$16 sps:$4 sm:$0xff]  }
 0x25d   :  { %3818 = vrcp.f32 %v1050_v5  ;;  %v4422_v5 = vld [vmem:[#allocation9 + $0xa8] ss:$16 sps:$4 sm:$0xff]   ;;  %v4424_v6 = vld [vmem:[#allocation9 + $0x84] ss:$16 sps:$4 sm:$0xff]  }
 0x25e   :  { %3820 = vrcp.f32 %v1061_v12  ;;  %v4436_v12 = vld [vmem:[#allocation9 + $0x64] ss:$16 sps:$4 sm:$0xff]  }
 0x268   :  { %v3815_v9 = vpop.eup %3814 }
 0x269   :  { %v3817_v10 = vpop.eup %3816 }
 0x26a   :  { %v3819_v11 = vpop.eup %3818  ;;  %v1065_v14 = vmul.f32 %v3817_v10, %v3815_v9  ;;  %v4427_v9 = vld [vmem:[#allocation9 + $0x8c] ss:$16 sps:$4 sm:$0xff]   ;;  %v4430_v10 = vld [vmem:[#allocation9 + $0x80] ss:$16 sps:$4 sm:$0xff]  }
 0x26b   :  { %v1064_v13 = vmul.f32 %v3819_v11, %v4306_v7  ;;  %v3821_v16 = vpop.eup %3820  ;;  %v4434_v11 = vld [vmem:[#allocation9 + $0x88] ss:$16 sps:$4 sm:$0xff]  }
 0x26d   :  { %v4347_v15 = vadd.f32 %v1065_v14, %v1064_v13  ;;  %v4439_v13 = vld [vmem:[#allocation9 + $0x6c] ss:$16 sps:$4 sm:$0xff]   ;;  %v4442_v14 = vld [vmem:[#allocation9 + $0x60] ss:$16 sps:$4 sm:$0xff]  }
 0x26f   :  { %3822 = vtanh.f32 %v4347_v15 }
 0x27c   :  { %v3823_v17 = vpop.eup %3822 }
 0x27d   :  { %v1068_v18 = vmul.f32 %v3823_v17, %v3821_v16  ;;  %v4448_v16 = vld [vmem:[#allocation9 + $0x44] ss:$16 sps:$4 sm:$0xff]   ;;  %v4451_v17 = vld [vmem:[#allocation9 + $0x4c] ss:$16 sps:$4 sm:$0xff]  }
 0x27f   :  { %1069 = vst [vmem:[#allocation3 + $0x1] sm:$0x1] %v1068_v18  ;;  %v1072_v19 = vpack.c.bf16 %v1068_v18, %v1068_v18  ;;  %v4454_v18 = vld [vmem:[#allocation9 + $0x40] ss:$16 sps:$4 sm:$0xff]  }
 0x281   :  { %1298 = vmatmul.mubr.bf16.vlgmr.msra.gmra.mxu0 %v1072_v19  ;;  %1339 = vmatmul.mubr.bf16.vlgmr.msra.gmra.mxu1 %v1072_v19  ;;  %v4458_v19 = vld [vmem:[#allocation9 + $0x48] ss:$16 sps:$4 sm:$0xff]  }
 0x282   :  { %1605 = vmatpush1.bf16.msra.mxu0 %v4162_v38  ;;  %1646 = vmatpush1.bf16.msra.mxu1 %v4164_v39 }
 0x283   :  { %1606 = vmatprep.subr.bf16.mxu0 %v4168_v40  ;;  %1647 = vmatprep.subr.bf16.mxu1 %v4170_v41 }
 0x284   :  { %1636 = vmatprep.mubr.bf16.mxu0 %v4082_v0  ;;  %1677 = vmatprep.mubr.bf16.mxu1 %v4082_v0 }
 0x286   :  { %1607 = vmatpush1.bf16.msra.mxu0 %v4172_v42  ;;  %1648 = vmatpush1.bf16.msra.mxu1 %v4176_v43 }
 0x287   :  { %1608 = vmatprep.subr.bf16.mxu0 %v4180_v44  ;;  %1649 = vmatprep.subr.bf16.mxu1 %v4182_v45 }
 0x28a   :  { %1609 = vmatpush1.bf16.msra.mxu0 %v4186_v46  ;;  %1650 = vmatpush1.bf16.msra.mxu1 %v4190_v47 }
 0x28b   :  { %1610 = vmatprep.subr.bf16.mxu0 %v4194_v48  ;;  %1651 = vmatprep.subr.bf16.mxu1 %v4196_v49 }
 0x28e   :  { %1611 = vmatpush1.bf16.msra.mxu0 %v4198_v50  ;;  %1652 = vmatpush1.bf16.msra.mxu1 %v4200_v51 }
 0x28f   :  { %1612 = vmatprep.subr.bf16.mxu0 %v4202_v52  ;;  %1653 = vmatprep.subr.bf16.mxu1 %v4204_v53  ;;  %v1071_v52 = vld [vmem:[#allocation2 + $0x2] ss:$8 sm:$0xf] }
 0x292   :  { %1613 = vmatpush1.bf16.msra.mxu0 %v4210_v54  ;;  %1654 = vmatpush1.bf16.msra.mxu1 %v4212_v55 }
 0x293   :  { %1614 = vmatprep.subr.bf16.mxu0 %v4214_v56  ;;  %1655 = vmatprep.subr.bf16.mxu1 %v4216_v57 }
 0x296   :  { %1615 = vmatpush1.bf16.msra.mxu0 %v4222_v58  ;;  %1656 = vmatpush1.bf16.msra.mxu1 %v4224_v59 }
 0x297   :  { %1616 = vmatprep.subr.bf16.mxu0 %v4226_v60  ;;  %1657 = vmatprep.subr.bf16.mxu1 %v4228_v61 }
 0x29a   :  { %1617 = vmatpush1.bf16.msra.mxu0 %v4234_v62  ;;  %1658 = vmatpush1.bf16.msra.mxu1 %v4236_v63 }
 0x29b   :  { %1618 = vmatprep.subr.bf16.mxu0 %v4238_v1  ;;  %1659 = vmatprep.subr.bf16.mxu1 %v4240_v2 }
 0x29e   :  { %1619 = vmatpush1.bf16.msra.mxu0 %v4248_v3  ;;  %1660 = vmatpush1.bf16.msra.mxu1 %v4250_v4 }
 0x29f   :  { %1943 = vmatprep.subr.bf16.mxu0 %v4393_v26  ;;  %1984 = vmatprep.subr.bf16.mxu1 %v4397_v27 }
 0x341   :  { %v1299_v38 = vpop.f32.mrf.mxu0  ;;  %v1340_v39 = vpop.f32.mrf.mxu1 }
 0x343   :  { %v1301_v40 = vpop.f32.mrf.mxu0  ;;  %v1342_v41 = vpop.f32.mrf.mxu1 }
 0x344   :  { %v1351_v42 = vcombine.low %v1299_v38, %v1301_v40  ;;  %v1352_v43 = vcombine.low %v1340_v39, %v1342_v41  ;;  %v4460_v38 = vld [vmem:[#allocation9 + $0x24] ss:$16 sps:$4 sm:$0xff]   ;;  %v4463_v39 = vld [vmem:[#allocation9 + $0x2c] ss:$16 sps:$4 sm:$0xff]   ;;  %v4466_v40 = vld [vmem:[#allocation9 + $0x20] ss:$16 sps:$4 sm:$0xff]  }
 0x345   :  { %v1303_v44 = vpop.f32.mrf.mxu0  ;;  %v1344_v45 = vpop.f32.mrf.mxu1  ;;  %v4470_v41 = vld [vmem:[#allocation9 + $0x28] ss:$16 sps:$4 sm:$0xff]  }
 0x346   :  { %v1359_v46 = vrot.slane %v1351_v42, %v4298_v37  ;;  %v1366_v47 = vrot.slane %v1352_v43, %v4298_v37  ;;  %v4472_v42 = vld [vmem:[#allocation9 + $0x4] ss:$16 sps:$4 sm:$0xff]   ;;  %v4475_v43 = vld [vmem:[#allocation9 + $0xc] ss:$16 sps:$4 sm:$0xff]   ;;  %v4478_v44 = vld [vmem:[#allocation9] ss:$16 sps:$4 sm:$0xff]  }
 0x347   :  { %v1304_v48 = vpop.f32.mrf.mxu0  ;;  %v1345_v49 = vpop.f32.mrf.mxu1  ;;  %v4482_v45 = vld [vmem:[#allocation9 + $0x8] ss:$16 sps:$4 sm:$0xff]  }
 0x348   :  { %v1367_v50 = vcombine.low %v1359_v46, %v1366_v47 }
 0x34a   :  { %v1374_v51 = vrot.slane %v1367_v50, %v4298_v37 }
 0x34c   :  { %v1376_v53 = vadd.f32 %v1374_v51, %v1071_v52 }
 0x34e   :  { %v3409_v54 = vmul.f32 -1.442695, %v1376_v53  ;;  %v1384_v55 = vrot.slane %v1376_v53, 1  ;;  %v1395_v57 = vrot.slane %v1376_v53, 3  ;;  %v1392_v60 = vrot.slane %v1376_v53, 2 }
 0x350   :  { %3824 = vpow2.f32 %v3409_v54  ;;  %v3410_v56 = vmul.f32 -1.442695, %v1384_v55  ;;  %v3411_v58 = vmul.f32 -1.442695, %v1395_v57 }
 0x352   :  { %3826 = vpow2.f32 %v3410_v56 }
 0x353   :  { %3828 = vpow2.f32 %v3411_v58 }
 0x35d   :  { %v3825_v59 = vpop.eup %3824 }
 0x35e   :  { %v1380_v61 = vadd.f32 1.0, %v3825_v59 }
 0x35f   :  { %v3827_v62 = vpop.eup %3826 }
 0x360   :  { %3830 = vrcp.f32 %v1380_v61  ;;  %v1389_v63 = vadd.f32 1.0, %v3827_v62  ;;  %v3829_v1 = vpop.eup %3828 }
 0x361   :  { %3832 = vtanh.f32 %v1392_v60  ;;  %v1400_v7 = vadd.f32 1.0, %v3829_v1  ;;  %v1410_v60 = vld [vmem:[#allocation2 + $0x3] ss:$8 sm:$0xf] }
 0x362   :  { %3834 = vrcp.f32 %v1389_v63 }
 0x363   :  { %3836 = vrcp.f32 %v1400_v7 }
 0x36d   :  { %v3831_v2 = vpop.eup %3830 }
 0x36e   :  { %v3833_v3 = vpop.eup %3832 }
 0x36f   :  { %v3835_v4 = vpop.eup %3834  ;;  %v1404_v8 = vmul.f32 %v3833_v3, %v3831_v2 }
 0x370   :  { %v1403_v20 = vmul.f32 %v3835_v4, %v4347_v15  ;;  %v3837_v22 = vpop.eup %3836  ;;  %v4446_v15 = vld [vmem:[#allocation9 + $0x68] ss:$16 sps:$4 sm:$0xff]  }
 0x372   :  { %v4386_v21 = vadd.f32 %v1404_v8, %v1403_v20 }
 0x374   :  { %3838 = vtanh.f32 %v4386_v21 }
 0x381   :  { %v3839_v23 = vpop.eup %3838 }
 0x382   :  { %v1407_v24 = vmul.f32 %v3839_v23, %v3837_v22 }
 0x384   :  { %1408 = vst [vmem:[#allocation3 + $0x2] sm:$0x1] %v1407_v24  ;;  %v1411_v25 = vpack.c.bf16 %v1407_v24, %v1407_v24 }
 0x386   :  { %1637 = vmatmul.mubr.bf16.vlgmr.msra.gmra.mxu0 %v1411_v25  ;;  %1678 = vmatmul.mubr.bf16.vlgmr.msra.gmra.mxu1 %v1411_v25 }
 0x387   :  { %1975 = vmatprep.mubr.bf16.mxu0 %v4082_v0  ;;  %2016 = vmatprep.mubr.bf16.mxu1 %v4082_v0 }
 0x388   :  { %1944 = vmatpush1.bf16.msra.mxu0 %v4391_v35  ;;  %1985 = vmatpush1.bf16.msra.mxu1 %v4395_v36 }
 0x389   :  { %1945 = vmatprep.subr.bf16.mxu0 %v4399_v28  ;;  %1986 = vmatprep.subr.bf16.mxu1 %v4402_v29 }
 0x38c   :  { %1946 = vmatpush1.bf16.msra.mxu0 %v4406_v30  ;;  %1987 = vmatpush1.bf16.msra.mxu1 %v4410_v31 }
 0x38d   :  { %1947 = vmatprep.subr.bf16.mxu0 %v4412_v32  ;;  %1988 = vmatprep.subr.bf16.mxu1 %v4415_v33 }
 0x390   :  { %1948 = vmatpush1.bf16.msra.mxu0 %v4418_v34  ;;  %1989 = vmatpush1.bf16.msra.mxu1 %v4422_v5 }
 0x391   :  { %1949 = vmatprep.subr.bf16.mxu0 %v4424_v6  ;;  %1990 = vmatprep.subr.bf16.mxu1 %v4427_v9 }
 0x394   :  { %1950 = vmatpush1.bf16.msra.mxu0 %v4430_v10  ;;  %1991 = vmatpush1.bf16.msra.mxu1 %v4434_v11 }
 0x395   :  { %1951 = vmatprep.subr.bf16.mxu0 %v4436_v12  ;;  %1992 = vmatprep.subr.bf16.mxu1 %v4439_v13 }
 0x398   :  { %1952 = vmatpush1.bf16.msra.mxu0 %v4442_v14  ;;  %1993 = vmatpush1.bf16.msra.mxu1 %v4446_v15 }
 0x399   :  { %1953 = vmatprep.subr.bf16.mxu0 %v4448_v16  ;;  %1994 = vmatprep.subr.bf16.mxu1 %v4451_v17 }
 0x39c   :  { %1954 = vmatpush1.bf16.msra.mxu0 %v4454_v18  ;;  %1995 = vmatpush1.bf16.msra.mxu1 %v4458_v19 }
 0x39d   :  { %1955 = vmatprep.subr.bf16.mxu0 %v4460_v38  ;;  %1996 = vmatprep.subr.bf16.mxu1 %v4463_v39 }
 0x3a0   :  { %1956 = vmatpush1.bf16.msra.mxu0 %v4466_v40  ;;  %1997 = vmatpush1.bf16.msra.mxu1 %v4470_v41 }
 0x3a1   :  { %1957 = vmatprep.subr.bf16.mxu0 %v4472_v42  ;;  %1998 = vmatprep.subr.bf16.mxu1 %v4475_v43 }
 0x3a4   :  { %1958 = vmatpush1.bf16.msra.mxu0 %v4478_v44  ;;  %1999 = vmatpush1.bf16.msra.mxu1 %v4482_v45 }
 0x3a5   :  { %2282 = vmatprep.subr.bf16.mxu0 %v4393_v26  ;;  %2323 = vmatprep.subr.bf16.mxu1 %v4397_v27 }
 0x446   :  { %v1638_v46 = vpop.f32.mrf.mxu0  ;;  %v1679_v47 = vpop.f32.mrf.mxu1 }
 0x448   :  { %v1640_v48 = vpop.f32.mrf.mxu0  ;;  %v1681_v49 = vpop.f32.mrf.mxu1 }
 0x449   :  { %v1690_v50 = vcombine.low %v1638_v46, %v1640_v48  ;;  %v1691_v51 = vcombine.low %v1679_v47, %v1681_v49 }
 0x44a   :  { %v1642_v52 = vpop.f32.mrf.mxu0  ;;  %v1683_v53 = vpop.f32.mrf.mxu1 }
 0x44b   :  { %v1698_v54 = vrot.slane %v1690_v50, %v4298_v37  ;;  %v1705_v55 = vrot.slane %v1691_v51, %v4298_v37 }
 0x44c   :  { %v1643_v56 = vpop.f32.mrf.mxu0  ;;  %v1684_v57 = vpop.f32.mrf.mxu1 }
 0x44d   :  { %v1706_v58 = vcombine.low %v1698_v54, %v1705_v55 }
 0x44f   :  { %v1713_v59 = vrot.slane %v1706_v58, %v4298_v37 }
 0x451   :  { %v1715_v61 = vadd.f32 %v1713_v59, %v1410_v60 }
 0x453   :  { %v3444_v62 = vmul.f32 -1.442695, %v1715_v61  ;;  %v1723_v63 = vrot.slane %v1715_v61, 1  ;;  %v1734_v2 = vrot.slane %v1715_v61, 3  ;;  %v1731_v7 = vrot.slane %v1715_v61, 2 }
 0x455   :  { %3840 = vpow2.f32 %v3444_v62  ;;  %v3445_v1 = vmul.f32 -1.442695, %v1723_v63  ;;  %v3446_v3 = vmul.f32 -1.442695, %v1734_v2 }
 0x457   :  { %3842 = vpow2.f32 %v3445_v1 }
 0x458   :  { %3844 = vpow2.f32 %v3446_v3 }
 0x462   :  { %v3841_v4 = vpop.eup %3840 }
 0x463   :  { %v1719_v20 = vadd.f32 1.0, %v3841_v4 }
 0x464   :  { %v3843_v8 = vpop.eup %3842 }
 0x465   :  { %3846 = vrcp.f32 %v1719_v20  ;;  %v1728_v22 = vadd.f32 1.0, %v3843_v8  ;;  %v3845_v23 = vpop.eup %3844 }
 0x466   :  { %3848 = vtanh.f32 %v1731_v7  ;;  %v1739_v47 = vadd.f32 1.0, %v3845_v23  ;;  %v1749_v7 = vld [vmem:[#allocation2 + $0x4] ss:$8 sm:$0xf] }
 0x467   :  { %3850 = vrcp.f32 %v1728_v22 }
 0x468   :  { %3852 = vrcp.f32 %v1739_v47 }
 0x472   :  { %v3847_v24 = vpop.eup %3846 }
 0x473   :  { %v3849_v25 = vpop.eup %3848 }
 0x474   :  { %v3851_v46 = vpop.eup %3850  ;;  %v1743_v49 = vmul.f32 %v3849_v25, %v3847_v24 }
 0x475   :  { %v1742_v48 = vmul.f32 %v3851_v46, %v4386_v21  ;;  %v3853_v51 = vpop.eup %3852 }
 0x477   :  { %v4493_v50 = vadd.f32 %v1743_v49, %v1742_v48 }
 0x479   :  { %3854 = vtanh.f32 %v4493_v50 }
 0x486   :  { %v3855_v52 = vpop.eup %3854 }
 0x487   :  { %v1746_v53 = vmul.f32 %v3855_v52, %v3853_v51 }
 0x489   :  { %1747 = vst [vmem:[#allocation3 + $0x3] sm:$0x1] %v1746_v53  ;;  %v1750_v54 = vpack.c.bf16 %v1746_v53, %v1746_v53 }
 0x48b   :  { %1976 = vmatmul.mubr.bf16.vlgmr.msra.gmra.mxu0 %v1750_v54  ;;  %2017 = vmatmul.mubr.bf16.vlgmr.msra.gmra.mxu1 %v1750_v54 }
 0x48c   :  { %2283 = vmatpush1.bf16.msra.mxu0 %v4391_v35  ;;  %2324 = vmatpush1.bf16.msra.mxu1 %v4395_v36 }
 0x48d   :  { %2284 = vmatprep.subr.bf16.mxu0 %v4399_v28  ;;  %2325 = vmatprep.subr.bf16.mxu1 %v4402_v29 }
 0x48e   :  { %2314 = vmatprep.mubr.bf16.mxu0 %v4082_v0  ;;  %2355 = vmatprep.mubr.bf16.mxu1 %v4082_v0 }
 0x490   :  { %2285 = vmatpush1.bf16.msra.mxu0 %v4406_v30  ;;  %2326 = vmatpush1.bf16.msra.mxu1 %v4410_v31 }
 0x491   :  { %2286 = vmatprep.subr.bf16.mxu0 %v4412_v32  ;;  %2327 = vmatprep.subr.bf16.mxu1 %v4415_v33 }
 0x494   :  { %2287 = vmatpush1.bf16.msra.mxu0 %v4418_v34  ;;  %2328 = vmatpush1.bf16.msra.mxu1 %v4422_v5 }
 0x495   :  { %2288 = vmatprep.subr.bf16.mxu0 %v4424_v6  ;;  %2329 = vmatprep.subr.bf16.mxu1 %v4427_v9 }
 0x498   :  { %2289 = vmatpush1.bf16.msra.mxu0 %v4430_v10  ;;  %2330 = vmatpush1.bf16.msra.mxu1 %v4434_v11 }
 0x499   :  { %2290 = vmatprep.subr.bf16.mxu0 %v4436_v12  ;;  %2331 = vmatprep.subr.bf16.mxu1 %v4439_v13 }
 0x49c   :  { %2291 = vmatpush1.bf16.msra.mxu0 %v4442_v14  ;;  %2332 = vmatpush1.bf16.msra.mxu1 %v4446_v15 }
 0x49d   :  { %2292 = vmatprep.subr.bf16.mxu0 %v4448_v16  ;;  %2333 = vmatprep.subr.bf16.mxu1 %v4451_v17 }
 0x4a0   :  { %2293 = vmatpush1.bf16.msra.mxu0 %v4454_v18  ;;  %2334 = vmatpush1.bf16.msra.mxu1 %v4458_v19 }
 0x4a1   :  { %2294 = vmatprep.subr.bf16.mxu0 %v4460_v38  ;;  %2335 = vmatprep.subr.bf16.mxu1 %v4463_v39 }
 0x4a4   :  { %2295 = vmatpush1.bf16.msra.mxu0 %v4466_v40  ;;  %2336 = vmatpush1.bf16.msra.mxu1 %v4470_v41 }
 0x4a5   :  { %2296 = vmatprep.subr.bf16.mxu0 %v4472_v42  ;;  %2337 = vmatprep.subr.bf16.mxu1 %v4475_v43 }
 0x4a8   :  { %2297 = vmatpush1.bf16.msra.mxu0 %v4478_v44  ;;  %2338 = vmatpush1.bf16.msra.mxu1 %v4482_v45 }
 0x4a9   :  { %2621 = vmatprep.subr.bf16.mxu0 %v4393_v26  ;;  %2662 = vmatprep.subr.bf16.mxu1 %v4397_v27 }
 0x54b   :  { %v1977_v21 = vpop.f32.mrf.mxu0  ;;  %v2018_v55 = vpop.f32.mrf.mxu1 }
 0x54d   :  { %v1979_v56 = vpop.f32.mrf.mxu0  ;;  %v2020_v57 = vpop.f32.mrf.mxu1 }
 0x54e   :  { %v2029_v58 = vcombine.low %v1977_v21, %v1979_v56  ;;  %v2030_v59 = vcombine.low %v2018_v55, %v2020_v57 }
 0x54f   :  { %v1981_v60 = vpop.f32.mrf.mxu0  ;;  %v2022_v61 = vpop.f32.mrf.mxu1 }
 0x550   :  { %v2037_v62 = vrot.slane %v2029_v58, %v4298_v37  ;;  %v2044_v63 = vrot.slane %v2030_v59, %v4298_v37 }
 0x551   :  { %v1982_v1 = vpop.f32.mrf.mxu0  ;;  %v2023_v2 = vpop.f32.mrf.mxu1 }
 0x552   :  { %v2045_v3 = vcombine.low %v2037_v62, %v2044_v63 }
 0x554   :  { %v2052_v4 = vrot.slane %v2045_v3, %v4298_v37 }
 0x556   :  { %v2054_v20 = vadd.f32 %v2052_v4, %v1749_v7 }
 0x558   :  { %v3479_v8 = vmul.f32 -1.442695, %v2054_v20  ;;  %v2062_v22 = vrot.slane %v2054_v20, 1  ;;  %v2073_v24 = vrot.slane %v2054_v20, 3  ;;  %v2070_v47 = vrot.slane %v2054_v20, 2 }
 0x55a   :  { %3856 = vpow2.f32 %v3479_v8  ;;  %v3480_v23 = vmul.f32 -1.442695, %v2062_v22  ;;  %v3481_v25 = vmul.f32 -1.442695, %v2073_v24 }
 0x55c   :  { %3858 = vpow2.f32 %v3480_v23 }
 0x55d   :  { %3860 = vpow2.f32 %v3481_v25 }
 0x567   :  { %v3857_v46 = vpop.eup %3856 }
 0x568   :  { %v2058_v48 = vadd.f32 1.0, %v3857_v46 }
 0x569   :  { %v3859_v49 = vpop.eup %3858 }
 0x56a   :  { %3862 = vrcp.f32 %v2058_v48  ;;  %v2067_v51 = vadd.f32 1.0, %v3859_v49  ;;  %v3861_v52 = vpop.eup %3860 }
 0x56b   :  { %3864 = vtanh.f32 %v2070_v47  ;;  %v2078_v55 = vadd.f32 1.0, %v3861_v52 }
 0x56c   :  { %3866 = vrcp.f32 %v2067_v51 }
 0x56d   :  { %3868 = vrcp.f32 %v2078_v55 }
 0x577   :  { %v3863_v53 = vpop.eup %3862 }
 0x578   :  { %v3865_v54 = vpop.eup %3864 }
 0x579   :  { %v3867_v21 = vpop.eup %3866  ;;  %v2082_v57 = vmul.f32 %v3865_v54, %v3863_v53 }
 0x57a   :  { %v2081_v56 = vmul.f32 %v3867_v21, %v4493_v50  ;;  %v3869_v59 = vpop.eup %3868 }
 0x57c   :  { %v4534_v58 = vadd.f32 %v2082_v57, %v2081_v56 }
 0x57e   :  { %3870 = vtanh.f32 %v4534_v58 }
 0x58b   :  { %v3871_v60 = vpop.eup %3870 }
 0x58c   :  { %v2085_v61 = vmul.f32 %v3871_v60, %v3869_v59 }
 0x58e   :  { %2086 = vst [vmem:[#allocation3 + $0x4] sm:$0x1] %v2085_v61  ;;  %v2089_v62 = vpack.c.bf16 %v2085_v61, %v2085_v61 }
 0x590   :  { %2315 = vmatmul.mubr.bf16.vlgmr.msra.gmra.mxu0 %v2089_v62  ;;  %2356 = vmatmul.mubr.bf16.vlgmr.msra.gmra.mxu1 %v2089_v62 }
 0x591   :  { %2622 = vmatpush1.bf16.msra.mxu0 %v4391_v35  ;;  %2663 = vmatpush1.bf16.msra.mxu1 %v4395_v36 }
 0x592   :  { %2623 = vmatprep.subr.bf16.mxu0 %v4399_v28  ;;  %2664 = vmatprep.subr.bf16.mxu1 %v4402_v29 }
 0x593   :  { %2653 = vmatprep.mubr.bf16.mxu0 %v4082_v0  ;;  %2694 = vmatprep.mubr.bf16.mxu1 %v4082_v0 }
 0x595   :  { %2624 = vmatpush1.bf16.msra.mxu0 %v4406_v30  ;;  %2665 = vmatpush1.bf16.msra.mxu1 %v4410_v31 }
 0x596   :  { %2625 = vmatprep.subr.bf16.mxu0 %v4412_v32  ;;  %2666 = vmatprep.subr.bf16.mxu1 %v4415_v33 }
 0x599   :  { %2626 = vmatpush1.bf16.msra.mxu0 %v4418_v34  ;;  %2667 = vmatpush1.bf16.msra.mxu1 %v4422_v5 }
 0x59a   :  { %2627 = vmatprep.subr.bf16.mxu0 %v4424_v6  ;;  %2668 = vmatprep.subr.bf16.mxu1 %v4427_v9 }
 0x59d   :  { %2628 = vmatpush1.bf16.msra.mxu0 %v4430_v10  ;;  %2669 = vmatpush1.bf16.msra.mxu1 %v4434_v11 }
 0x59e   :  { %2629 = vmatprep.subr.bf16.mxu0 %v4436_v12  ;;  %2670 = vmatprep.subr.bf16.mxu1 %v4439_v13 }
 0x5a1   :  { %2630 = vmatpush1.bf16.msra.mxu0 %v4442_v14  ;;  %2671 = vmatpush1.bf16.msra.mxu1 %v4446_v15 }
 0x5a2   :  { %2631 = vmatprep.subr.bf16.mxu0 %v4448_v16  ;;  %2672 = vmatprep.subr.bf16.mxu1 %v4451_v17 }
 0x5a5   :  { %2632 = vmatpush1.bf16.msra.mxu0 %v4454_v18  ;;  %2673 = vmatpush1.bf16.msra.mxu1 %v4458_v19 }
 0x5a6   :  { %2633 = vmatprep.subr.bf16.mxu0 %v4460_v38  ;;  %2674 = vmatprep.subr.bf16.mxu1 %v4463_v39 }
 0x5a9   :  { %2634 = vmatpush1.bf16.msra.mxu0 %v4466_v40  ;;  %2675 = vmatpush1.bf16.msra.mxu1 %v4470_v41 }
 0x5aa   :  { %2635 = vmatprep.subr.bf16.mxu0 %v4472_v42  ;;  %2676 = vmatprep.subr.bf16.mxu1 %v4475_v43 }
 0x5ad   :  { %2636 = vmatpush1.bf16.msra.mxu0 %v4478_v44  ;;  %2677 = vmatpush1.bf16.msra.mxu1 %v4482_v45 }
 0x5ae   :  { %2960 = vmatprep.subr.bf16.mxu0 %v4393_v26  ;;  %3001 = vmatprep.subr.bf16.mxu1 %v4397_v27  ;;  %v2088_v26 = vld [vmem:[#allocation2 + $0x5] ss:$8 sm:$0xf] }
 0x650   :  { %v2316_v50 = vpop.f32.mrf.mxu0  ;;  %v2357_v63 = vpop.f32.mrf.mxu1 }
 0x652   :  { %v2318_v1 = vpop.f32.mrf.mxu0  ;;  %v2359_v2 = vpop.f32.mrf.mxu1 }
 0x653   :  { %v2368_v3 = vcombine.low %v2316_v50, %v2318_v1  ;;  %v2369_v4 = vcombine.low %v2357_v63, %v2359_v2 }
 0x654   :  { %v2320_v7 = vpop.f32.mrf.mxu0  ;;  %v2361_v20 = vpop.f32.mrf.mxu1 }
 0x655   :  { %v2376_v8 = vrot.slane %v2368_v3, %v4298_v37  ;;  %v2383_v22 = vrot.slane %v2369_v4, %v4298_v37 }
 0x656   :  { %v2321_v23 = vpop.f32.mrf.mxu0  ;;  %v2362_v24 = vpop.f32.mrf.mxu1 }
 0x657   :  { %v2384_v25 = vcombine.low %v2376_v8, %v2383_v22 }
 0x659   :  { %v2391_v46 = vrot.slane %v2384_v25, %v4298_v37 }
 0x65b   :  { %v2393_v47 = vadd.f32 %v2391_v46, %v2088_v26  ;;  %v3784_v46 = vld [vmem:[#allocation10 + $0x38] sm:$0xff]   ;;  %v4084_v26 = vmov 0.0  }
 0x65d   :  { %v3514_v27 = vmul.f32 -1.442695, %v2393_v47  ;;  %v2401_v48 = vrot.slane %v2393_v47, 1  ;;  %v2412_v51 = vrot.slane %v2393_v47, 3  ;;  %v2409_v54 = vrot.slane %v2393_v47, 2  ;;  %v3785_v47 = vld [vmem:[#allocation10 + $0x30] sm:$0xff]  }
 0x65f   :  { %3872 = vpow2.f32 %v3514_v27  ;;  %v3515_v49 = vmul.f32 -1.442695, %v2401_v48  ;;  %v3516_v52 = vmul.f32 -1.442695, %v2412_v51  ;;  %v3786_v27 = vld [vmem:[#allocation10 + $0x28] sm:$0xff]   ;;  %v3787_v48 = vld [vmem:[#allocation10 + $0x20] sm:$0xff]  }
 0x660   :  { %v3789_v51 = vld [vmem:[#allocation10 + $0x10] sm:$0xff]  }
 0x661   :  { %3874 = vpow2.f32 %v3515_v49  ;;  %v3788_v49 = vld [vmem:[#allocation10 + $0x18] sm:$0xff]  }
 0x662   :  { %3876 = vpow2.f32 %v3516_v52  ;;  %v3790_v52 = vld [vmem:[#allocation10 + $0x8] sm:$0xff]  }
 0x66c   :  { %v3873_v53 = vpop.eup %3872 }
 0x66d   :  { %v2397_v21 = vadd.f32 1.0, %v3873_v53  ;;  %v3791_v53 = vld [vmem:[#allocation10] sm:$0xff]  }
 0x66e   :  { %v3875_v55 = vpop.eup %3874 }
 0x66f   :  { %3878 = vrcp.f32 %v2397_v21  ;;  %v2406_v56 = vadd.f32 1.0, %v3875_v55  ;;  %v3877_v57 = vpop.eup %3876 }
 0x670   :  { %3880 = vtanh.f32 %v2409_v54  ;;  %v2417_v62 = vadd.f32 1.0, %v3877_v57 }
 0x671   :  { %3882 = vrcp.f32 %v2406_v56 }
 0x672   :  { %3884 = vrcp.f32 %v2417_v62 }
 0x67c   :  { %v3879_v59 = vpop.eup %3878 }
 0x67d   :  { %v3881_v60 = vpop.eup %3880 }
 0x67e   :  { %v3883_v61 = vpop.eup %3882  ;;  %v2421_v63 = vmul.f32 %v3881_v60, %v3879_v59 }
 0x67f   :  { %v2420_v50 = vmul.f32 %v3883_v61, %v4534_v58  ;;  %v3885_v2 = vpop.eup %3884 }
 0x681   :  { %v4575_v1 = vadd.f32 %v2421_v63, %v2420_v50 }
 0x683   :  { %3886 = vtanh.f32 %v4575_v1 }
 0x690   :  { %v3887_v3 = vpop.eup %3886 }
 0x691   :  { %v2424_v4 = vmul.f32 %v3887_v3, %v3885_v2 }
 0x693   :  { %2425 = vst [vmem:[#allocation3 + $0x5] sm:$0x1] %v2424_v4  ;;  %v2428_v7 = vpack.c.bf16 %v2424_v4, %v2424_v4  ;;  %v2766_v4 = vld [vmem:[#allocation2 + $0x7] ss:$8 sm:$0xf] }
 0x695   :  { %2654 = vmatmul.mubr.bf16.vlgmr.msra.gmra.mxu0 %v2428_v7  ;;  %2695 = vmatmul.mubr.bf16.vlgmr.msra.gmra.mxu1 %v2428_v7 }
 0x696   :  { %2961 = vmatpush1.bf16.msra.mxu0 %v4391_v35  ;;  %3002 = vmatpush1.bf16.msra.mxu1 %v4395_v36 }
 0x697   :  { %2962 = vmatprep.subr.bf16.mxu0 %v4399_v28  ;;  %3003 = vmatprep.subr.bf16.mxu1 %v4402_v29 }
 0x698   :  { %2992 = vmatprep.mubr.bf16.mxu0 %v4082_v0  ;;  %3033 = vmatprep.mubr.bf16.mxu1 %v4082_v0 }
 0x69a   :  { %2963 = vmatpush1.bf16.msra.mxu0 %v4406_v30  ;;  %3004 = vmatpush1.bf16.msra.mxu1 %v4410_v31 }
 0x69b   :  { %2964 = vmatprep.subr.bf16.mxu0 %v4412_v32  ;;  %3005 = vmatprep.subr.bf16.mxu1 %v4415_v33 }
 0x69e   :  { %2965 = vmatpush1.bf16.msra.mxu0 %v4418_v34  ;;  %3006 = vmatpush1.bf16.msra.mxu1 %v4422_v5 }
 0x69f   :  { %2966 = vmatprep.subr.bf16.mxu0 %v4424_v6  ;;  %3007 = vmatprep.subr.bf16.mxu1 %v4427_v9 }
 0x6a2   :  { %2967 = vmatpush1.bf16.msra.mxu0 %v4430_v10  ;;  %3008 = vmatpush1.bf16.msra.mxu1 %v4434_v11  ;;  %v2427_v11 = vld [vmem:[#allocation2 + $0x6] ss:$8 sm:$0xf] }
 0x6a3   :  { %2968 = vmatprep.subr.bf16.mxu0 %v4436_v12  ;;  %3009 = vmatprep.subr.bf16.mxu1 %v4439_v13 }
 0x6a6   :  { %2969 = vmatpush1.bf16.msra.mxu0 %v4442_v14  ;;  %3010 = vmatpush1.bf16.msra.mxu1 %v4446_v15 }
 0x6a7   :  { %2970 = vmatprep.subr.bf16.mxu0 %v4448_v16  ;;  %3011 = vmatprep.subr.bf16.mxu1 %v4451_v17 }
 0x6aa   :  { %2971 = vmatpush1.bf16.msra.mxu0 %v4454_v18  ;;  %3012 = vmatpush1.bf16.msra.mxu1 %v4458_v19 }
 0x6ab   :  { %2972 = vmatprep.subr.bf16.mxu0 %v4460_v38  ;;  %3013 = vmatprep.subr.bf16.mxu1 %v4463_v39 }
 0x6ae   :  { %2973 = vmatpush1.bf16.msra.mxu0 %v4466_v40  ;;  %3014 = vmatpush1.bf16.msra.mxu1 %v4470_v41 }
 0x6af   :  { %2974 = vmatprep.subr.bf16.mxu0 %v4472_v42  ;;  %3015 = vmatprep.subr.bf16.mxu1 %v4475_v43 }
 0x6b2   :  { %2975 = vmatpush1.bf16.msra.mxu0 %v4478_v44  ;;  %3016 = vmatpush1.bf16.msra.mxu1 %v4482_v45 }
 0x6b3   :  { %3605 = vmatprep.subr.bf16.mxu0 %v4084_v26 }
 0x755   :  { %v2655_v0 = vpop.f32.mrf.mxu0  ;;  %v2696_v35 = vpop.f32.mrf.mxu1 }
 0x757   :  { %v2657_v36 = vpop.f32.mrf.mxu0  ;;  %v2698_v28 = vpop.f32.mrf.mxu1 }
 0x758   :  { %v2707_v29 = vcombine.low %v2655_v0, %v2657_v36  ;;  %v2708_v30 = vcombine.low %v2696_v35, %v2698_v28 }
 0x759   :  { %v2659_v31 = vpop.f32.mrf.mxu0  ;;  %v2700_v32 = vpop.f32.mrf.mxu1 }
 0x75a   :  { %v2715_v33 = vrot.slane %v2707_v29, %v4298_v37  ;;  %v2722_v34 = vrot.slane %v2708_v30, %v4298_v37 }
 0x75b   :  { %v2660_v5 = vpop.f32.mrf.mxu0  ;;  %v2701_v6 = vpop.f32.mrf.mxu1 }
 0x75c   :  { %v2723_v9 = vcombine.low %v2715_v33, %v2722_v34 }
 0x75e   :  { %v2730_v10 = vrot.slane %v2723_v9, %v4298_v37 }
 0x760   :  { %v2732_v12 = vadd.f32 %v2730_v10, %v2427_v11 }
 0x762   :  { %v3549_v13 = vmul.f32 -1.442695, %v2732_v12  ;;  %v2740_v14 = vrot.slane %v2732_v12, 1  ;;  %v2751_v16 = vrot.slane %v2732_v12, 3  ;;  %v2748_v19 = vrot.slane %v2732_v12, 2 }
 0x764   :  { %3888 = vpow2.f32 %v3549_v13  ;;  %v3550_v15 = vmul.f32 -1.442695, %v2740_v14  ;;  %v3551_v17 = vmul.f32 -1.442695, %v2751_v16 }
 0x766   :  { %3890 = vpow2.f32 %v3550_v15 }
 0x767   :  { %3892 = vpow2.f32 %v3551_v17 }
 0x771   :  { %v3889_v18 = vpop.eup %3888 }
 0x772   :  { %v2736_v38 = vadd.f32 1.0, %v3889_v18 }
 0x773   :  { %v3891_v39 = vpop.eup %3890 }
 0x774   :  { %3894 = vrcp.f32 %v2736_v38  ;;  %v2745_v40 = vadd.f32 1.0, %v3891_v39  ;;  %v3893_v41 = vpop.eup %3892 }
 0x775   :  { %3896 = vtanh.f32 %v2748_v19  ;;  %v2756_v45 = vadd.f32 1.0, %v3893_v41  ;;  %v3587_v19 = vld [vmem:[%s4640_s7] ss:$0 sm:$0xff] }
 0x776   :  { %3898 = vrcp.f32 %v2745_v40 }
 0x777   :  { %3900 = vrcp.f32 %v2756_v45 }
 0x781   :  { %v3895_v42 = vpop.eup %3894 }
 0x782   :  { %v3897_v43 = vpop.eup %3896 }
 0x783   :  { %v3899_v44 = vpop.eup %3898  ;;  %v2760_v20 = vmul.f32 %v3897_v43, %v3895_v42 }
 0x784   :  { %v2759_v58 = vmul.f32 %v3899_v44, %v4575_v1  ;;  %v3901_v22 = vpop.eup %3900 }
 0x786   :  { %v4614_v8 = vadd.f32 %v2760_v20, %v2759_v58 }
 0x788   :  { %3902 = vtanh.f32 %v4614_v8 }
 0x795   :  { %v3903_v23 = vpop.eup %3902 }
 0x796   :  { %v2763_v24 = vmul.f32 %v3903_v23, %v3901_v22 }
 0x798   :  { %2764 = vst [vmem:[#allocation3 + $0x6] sm:$0x1] %v2763_v24  ;;  %v2767_v25 = vpack.c.bf16 %v2763_v24, %v2763_v24 }
 0x79a   :  { %2993 = vmatmul.mubr.bf16.vlgmr.msra.gmra.mxu0 %v2767_v25  ;;  %3034 = vmatmul.mubr.bf16.vlgmr.msra.gmra.mxu1 %v2767_v25 }
 0x79b   :  { %3606 = vmatpush3.bf16.msra.mxu0 %v3784_v46  ;;  %3621 = vmatprep.mubr.msk.bf16.mxu0 %vm4085_vm0, %v4084_v26 }
 0x79c   :  { %3607 = vmatprep.subr.bf16.mxu0 %v4084_v26 }
 0x79f   :  { %3608 = vmatpush3.bf16.msra.mxu0 %v3785_v47 }
 0x7a0   :  { %3609 = vmatprep.subr.bf16.mxu0 %v4084_v26 }
 0x7a3   :  { %3610 = vmatpush3.bf16.msra.mxu0 %v3786_v27 }
 0x7a4   :  { %3611 = vmatprep.subr.bf16.mxu0 %v4084_v26 }
 0x7a7   :  { %3612 = vmatpush3.bf16.msra.mxu0 %v3787_v48 }
 0x7a8   :  { %3613 = vmatprep.subr.bf16.mxu0 %v4084_v26 }
 0x7ab   :  { %3614 = vmatpush3.bf16.msra.mxu0 %v3788_v49 }
 0x7ac   :  { %3615 = vmatprep.subr.bf16.mxu0 %v4084_v26 }
 0x7af   :  { %3616 = vmatpush3.bf16.msra.mxu0 %v3789_v51 }
 0x7b0   :  { %3617 = vmatprep.subr.bf16.mxu0 %v4084_v26 }
 0x7b3   :  { %3618 = vmatpush3.bf16.msra.mxu0 %v3790_v52 }
 0x7b4   :  { %3619 = vmatprep.subr.bf16.mxu0 %v4084_v26 }
 0x7b7   :  { %3620 = vmatpush3.bf16.msra.mxu0 %v3791_v53 }
 0x85a   :  { %v2994_v54 = vpop.f32.mrf.mxu0  ;;  %v3035_v21 = vpop.f32.mrf.mxu1 }
 0x85c   :  { %v2996_v55 = vpop.f32.mrf.mxu0  ;;  %v3037_v56 = vpop.f32.mrf.mxu1 }
 0x85d   :  { %v3046_v57 = vcombine.low %v2994_v54, %v2996_v55  ;;  %v3047_v59 = vcombine.low %v3035_v21, %v3037_v56 }
 0x85e   :  { %v2998_v60 = vpop.f32.mrf.mxu0  ;;  %v3039_v61 = vpop.f32.mrf.mxu1 }
 0x85f   :  { %v3054_v62 = vrot.slane %v3046_v57, %v4298_v37  ;;  %v3061_v50 = vrot.slane %v3047_v59, %v4298_v37 }
 0x860   :  { %v2999_v63 = vpop.f32.mrf.mxu0  ;;  %v3040_v1 = vpop.f32.mrf.mxu1 }
 0x861   :  { %v3062_v2 = vcombine.low %v3054_v62, %v3061_v50 }
 0x863   :  { %v3069_v3 = vrot.slane %v3062_v2, %v4298_v37 }
 0x865   :  { %v3071_v7 = vadd.f32 %v3069_v3, %v2766_v4 }
 0x867   :  { %v3584_v0 = vmul.f32 -1.442695, %v3071_v7  ;;  %v3079_v35 = vrot.slane %v3071_v7, 1  ;;  %v3090_v28 = vrot.slane %v3071_v7, 3  ;;  %v3087_v31 = vrot.slane %v3071_v7, 2 }
 0x869   :  { %3904 = vpow2.f32 %v3584_v0  ;;  %v3585_v36 = vmul.f32 -1.442695, %v3079_v35  ;;  %v3586_v29 = vmul.f32 -1.442695, %v3090_v28 }
 0x86b   :  { %3906 = vpow2.f32 %v3585_v36 }
 0x86c   :  { %3908 = vpow2.f32 %v3586_v29 }
 0x876   :  { %v3905_v30 = vpop.eup %3904 }
 0x877   :  { %v3075_v32 = vadd.f32 1.0, %v3905_v30 }
 0x878   :  { %v3907_v33 = vpop.eup %3906 }
 0x879   :  { %3910 = vrcp.f32 %v3075_v32  ;;  %v3084_v34 = vadd.f32 1.0, %v3907_v33  ;;  %v3909_v5 = vpop.eup %3908 }
 0x87a   :  { %3912 = vtanh.f32 %v3087_v31  ;;  %v3095_v10 = vadd.f32 1.0, %v3909_v5 }
 0x87b   :  { %3914 = vrcp.f32 %v3084_v34 }
 0x87c   :  { %3916 = vrcp.f32 %v3095_v10 }
 0x886   :  { %v3911_v37 = vpop.eup %3910 }
 0x887   :  { %v3913_v6 = vpop.eup %3912 }
 0x888   :  { %v3915_v9 = vpop.eup %3914  ;;  %v3099_v12 = vmul.f32 %v3913_v6, %v3911_v37 }
 0x889   :  { %v3098_v11 = vmul.f32 %v3915_v9, %v4614_v8  ;;  %v3917_v14 = vpop.eup %3916 }
 0x88b   :  { %v3100_v13 = vadd.f32 %v3099_v12, %v3098_v11 }
 0x88d   :  { %3918 = vtanh.f32 %v3100_v13  ;;  %3105 = vst [vmem:[#allocation15] sm:$0x1] %v3100_v13 }
 0x89a   :  { %v3919_v15 = vpop.eup %3918 }
 0x89b   :  { %v3102_v16 = vmul.f32 %v3919_v15, %v3917_v14 }
 0x89d   :  { %3103 = vst [vmem:[#allocation3 + $0x7] sm:$0x1] %v3102_v16  ;;  %3104 = vst [vmem:[#allocation13] sm:$0x1] %v3102_v16 }
 0x8a4   :  { %v3106_v17 = vld [vmem:[#allocation3] sm:$0xff] }
 0x8a5   :  { %v3107_v18 = vpack.c.bf16 %v3106_v17, %v3106_v17 }
 0x8a7   :  { %3622 = vmatmul.mubr.bf16.vlgmr.msra.gmra.mxu0 %v3107_v18 }
 0x967   :  { %v3213_v38 = vpop.f32.mrf.mxu0 }
 0x968   :  { %v3214_v39 = vadd.f32 %v3587_v19, %v3213_v38 }
 0x969   :  { %v3623_v40 = vpop.f32.mrf.mxu0 }
 0x96a   :  { %3219 = vmax.xlane.f32.xlu0 %v3214_v39 }
 0x96b   :  { %v3216_v41 = vpop.f32.mrf.mxu0 }
 0x96d   :  { %v3624_v42 = vpop.f32.mrf.mxu0 }
 0x9f3   :  { %v3220_v43 = vpop.xlane.xlu0 %3219 }
 0x9f4   :  { %v3221_v44 = vsub.f32 %v3214_v39, %v3220_v43 }
 0x9f6   :  { %v3222_v45 = vmul.f32 1.442695, %v3221_v44 }
 0x9f8   :  { %3920 = vpow2.f32 %v3222_v45 }
 0xa05   :  { %v3921_v58 = vpop.eup %3920 }
 0xa06   :  { %3224 = vadd.xlane.f32.xlu0 %v3921_v58 }
 0xa07   :  { %4015 = shalt.err (!%p4012_p10)
}
 0xa08   :  { %3250 = dma.vmem_to_hbm [thread:$0]  %s3248_s19, 16, %s4642_s9, [#allocation14]  }
 0xa09   :  { %s4087_s23 = smov [#allocation15]  }
 0xa0a   :  { %s3257_s24 = sshll.u32 %s4087_s23, 4  ;;  %s3258_s24 = int_to_ptr.vmem [resolvable:$true] %s3257_s24 }
 0xa0b   :  { %s4024_s25 = scalar_lea.vmem %s3258_s24, 16  ;;  %s4028_s26 = scalar_lea.vmem %s3258_s24, 32 }
 0xa0c   :  { %p4025_p11 = scmp.ne.s32.totalorder %s3258_s24, %s4024_s25  ;;  %p4029_p12 = scmp.lt.s32.totalorder %s3258_s24, %s3258_s24 }
 0xa0d   :  { %p4030_p13 = scmp.lt.s32.totalorder %s4028_s26, %s4024_s25 }
 0xa0f   :  { %p4031_p0 = por %p4030_p13, %p4029_p12 }
 0xa11   :  { %p4032_p1 = pnand %p4031_p0, %p4025_p11 }
 0xa13   :  { %4035 = shalt.err (!%p4032_p1)
}
 0xa14   :  { %3260 = dma.vmem_to_hbm [thread:$0]  %s3258_s24, 16, %s4643_s10, [#allocation14]  }
 0xa15   :  { %s4088_s9 = smov [#allocation12]  }
 0xa16   :  { %s3237_s28 = sshll.u32 %s4088_s9, 4  ;;  %s3238_s28 = int_to_ptr.vmem [resolvable:$true] %s3237_s28 }
 0xa17   :  { %s4044_s29 = scalar_lea.vmem %s3238_s28, 128  ;;  %p4049_p3 = scmp.lt.s32.totalorder %s3238_s28, %s3238_s28 }
 0xa18   :  { %p4045_p2 = scmp.ne.s32.totalorder %s3238_s28, %s4044_s29  ;;  %p4050_p4 = scmp.lt.s32.totalorder %s4044_s29, %s4044_s29 }
 0xa1a   :  { %p4051_p5 = por %p4050_p4, %p4049_p3 }
 0xa1c   :  { %p4052_p6 = pnand %p4051_p5, %p4045_p2 }
 0xa8f   :  { %v3225_v20 = vpop.xlane.xlu0 %3224 }
 0xa90   :  { %3922 = vlog2.f32 %v3225_v20 }
 0xa9d   :  { %v3923_v8 = vpop.eup %3922 }
 0xa9e   :  { %v3227_v22 = vmul.f32 0.6931472, %v3923_v8 }
 0xaa0   :  { %v3228_v23 = vadd.f32 %v3227_v22, %v3220_v43 }
 0xaa2   :  { %v3229_v24 = vsub.f32 %v3214_v39, %v3228_v23 }
 0xaa4   :  { %3230 = vst [vmem:[#allocation12] sm:$0xff] %v3229_v24 }
 0xaa5   :  { %4055 = shalt.err (!%p4052_p6)
}
 0xaa6   :  { %3240 = dma.vmem_to_hbm [thread:$0]  %s3238_s28, 128, %s4641_s8, [#allocation6]  }
 0xaa7   :  { %4070 = dma.done.wait [#allocation6], 128  }
 0xaa8   :  { %4071 = vsyncadd [#allocation6], 4294967168 }
 0xaa9   :  { %4072 = dma.done.wait [#allocation14], 32  }
 0xaaa   :  { %4073 = vsyncadd [#allocation14], 4294967264 }
 0xaab   :  { %3270 = vsyncpa [#allocation5], 1 }
 0xaac   :  { %3271 = vsyncpa [#allocation8], 1 }
 0xaad   :  { %3272 = vsyncpa [#allocation11], 1 }
 0xaae   :  { %3273 = vsyncpa [#allocation6], 1 }
 0xaaf   :  { %3274 = vsyncpa [#allocation14], 1 }

</bundles_post_ra>
